<compile_context>
chip_gen: v6e
topology: v6e:2x2x1
jax: 0.10.0
libtpu: 0.0.40
codegen_flags: <defaults>
</compile_context>

<pallas_src>
import functools

import jax
import jax.numpy as jnp
from jax.experimental import pallas as pl
from jax.experimental.pallas import tpu as pltpu


_INV_SQRT2 = 0.7071067811865476


def _erf_f32(x):
    # Exact-GELU needs erf; Mosaic has no guaranteed lax.erf lowering, so use the
    # Abramowitz & Stegun 7.1.26 rational approximation (|abs err| < 1.5e-7, i.e. f32-level).
    a = jnp.abs(x)
    t = 1.0 / (1.0 + 0.3275911 * a)
    poly = t * (0.254829592
                + t * (-0.284496736
                       + t * (1.421413741
                              + t * (-1.453152027
                                     + t * 1.061405429))))
    e = 1.0 - poly * jnp.exp(-(a * a))
    return jnp.where(x < 0.0, -e, e)


def _gelu_exact_f32(x):
    # PyTorch nn.GELU() default (erf-based, not tanh approximation).
    return 0.5 * x * (1.0 + _erf_f32(x * _INV_SQRT2))


def _ff_fused_kernel(x_ref, w1_ref, b1_ref, w2_ref, b2_ref, o_ref):
    # x_ref : (tm, C)        bf16
    # w1_ref: (C, Hp)        bf16    b1_ref: (1, Hp)  f32
    # w2_ref: (Hp, Cp)       bf16    b2_ref: (1, Cp)  f32
    # o_ref : (tm, Cp)       f32
    h = jnp.dot(x_ref[...], w1_ref[...], preferred_element_type=jnp.float32)
    h = _gelu_exact_f32(h + b1_ref[...])                      # f32 elementwise
    y = jnp.dot(h.astype(w2_ref.dtype), w2_ref[...],          # bf16 MXU operand, f32 acc
                preferred_element_type=jnp.float32)
    o_ref[...] = y + b2_ref[...]


def _round_up(x, m):
    return (x + m - 1) // m * m


def feed_forward_2d(x2d, w1, b1, w2, b2, *, mxu_dtype=jnp.bfloat16, tm_target=256):
    """Fused y = GELU(x2d @ w1 + b1) @ w2 + b2.

    x2d: (M, C) f32, w1: (C, hid), b1: (hid,), w2: (hid, C_out), b2: (C_out,).
    Returns (M, C_out) f32.
    """
    m, c = x2d.shape
    hid = w1.shape[1]
    c_out = w2.shape[1]

    # Lane-dense padding of the N dims (hidden and output channels) to multiples of 128.
    hid_p = _round_up(hid, 128)
    c_out_p = _round_up(c_out, 128)

    # Row tile: as large as sensible, but keep >=2 grid steps (megacore on v7x).
    if m >= 2 * tm_target:
        tm = tm_target
    else:
        tm = max(8, _round_up(pl.cdiv(m, 2), 8))
    m_p = _round_up(m, tm)

    # Zero-pad weights/biases once (exact: padded hidden cols give gelu(0)=0; padded W2
    # rows/cols contribute 0 and padded output columns are sliced away below).
    w1p = jnp.zeros((c, hid_p), jnp.float32).at[:, :hid].set(w1).astype(mxu_dtype)
    b1p = jnp.zeros((1, hid_p), jnp.float32).at[:, :hid].set(b1)
    w2p = jnp.zeros((hid_p, c_out_p), jnp.float32).at[:hid, :c_out].set(w2).astype(mxu_dtype)
    b2p = jnp.zeros((1, c_out_p), jnp.float32).at[:, :c_out].set(b2)

    xp = x2d if m_p == m else jnp.zeros((m_p, c), x2d.dtype).at[:m].set(x2d)
    xp = xp.astype(mxu_dtype)

    grid = (m_p // tm,)

    mxu_isz = jnp.dtype(mxu_dtype).itemsize
    bytes_per_step = (tm * c * mxu_isz            # x tile
                      + c * hid_p * mxu_isz       # w1
                      + hid_p * 4                 # b1
                      + hid_p * c_out_p * mxu_isz # w2
                      + c_out_p * 4               # b2
                      + tm * c_out_p * 4)         # out tile
    # Double-buffered blocks + headroom; capped at v7x physical VMEM.
    vmem_limit = int(min(64 * 1024 * 1024, max(4 * 1024 * 1024, 4 * bytes_per_step)))

    out = pl.pallas_call(
        _ff_fused_kernel,
        grid=grid,
        in_specs=[
            pl.BlockSpec((tm, c), lambda i: (i, 0)),          # x row tile
            pl.BlockSpec((c, hid_p), lambda i: (0, 0)),       # w1 (replicated)
            pl.BlockSpec((1, hid_p), lambda i: (0, 0)),       # b1
            pl.BlockSpec((hid_p, c_out_p), lambda i: (0, 0)), # w2
            pl.BlockSpec((1, c_out_p), lambda i: (0, 0)),     # b2
        ],
        out_specs=pl.BlockSpec((tm, c_out_p), lambda i: (i, 0)),
        out_shape=jax.ShapeDtypeStruct((m_p, c_out_p), jnp.float32),
        compiler_params=pltpu.CompilerParams(
            dimension_semantics=("parallel",),
            vmem_limit_bytes=vmem_limit,
        ),
    )(xp, w1p, b1p, w2p, b2p)

    return out[:m, :c_out]


def unidirectional_feed_forward(params, x_nchw, *, mxu_dtype=jnp.bfloat16):
    """Forward pass of UnidirectionalFeedForward on an NCHW input (PyTorch layout)."""
    b, c, h, w = x_nchw.shape
    hid = params["w1"].shape[0]

    x2d = jnp.transpose(x_nchw, (0, 2, 3, 1)).reshape(b * h * w, c).astype(jnp.float32)

    # torch Conv2d 1x1 weights (out, in, 1, 1) -> matmul layout (in, out)
    w1 = params["w1"].reshape(hid, c).T       # (dim, hid)
    w2 = params["w2"].reshape(c, hid).T       # (hid, dim)

    y2d = feed_forward_2d(x2d, w1, params["b1"], w2, params["b2"], mxu_dtype=mxu_dtype)
    return jnp.transpose(y2d.reshape(b, h, w, c), (0, 3, 1, 2))


def init_params(key, *, dim, mult):
    # Shapes follow nn.Conv2d(dim, dim*mult, 1) and nn.Conv2d(dim*mult, dim, 1).
    hid = dim * mult
    k1, k2, k3, k4 = jax.random.split(key, 4)
    s1 = 1.0 / (dim ** 0.5)
    s2 = 1.0 / (hid ** 0.5)
    return {
        "w1": jax.random.uniform(k1, (hid, dim, 1, 1), jnp.float32, -s1, s1),
        "b1": jax.random.uniform(k2, (hid,), jnp.float32, -s1, s1),
        "w2": jax.random.uniform(k3, (dim, hid, 1, 1), jnp.float32, -s2, s2),
        "b2": jax.random.uniform(k4, (dim,), jnp.float32, -s2, s2),
    }


def _reference(params, x_nchw):
    # Plain-JAX reference of the same module (for an in-script sanity check).
    b, c, h, w = x_nchw.shape
    hid = params["w1"].shape[0]
    xh = jnp.transpose(x_nchw, (0, 2, 3, 1)).astype(jnp.float32)
    y = jnp.einsum("bhwc,oc->bhwo", xh, params["w1"].reshape(hid, c)) + params["b1"]
    y = jax.nn.gelu(y, approximate=False)
    y = jnp.einsum("bhwo,co->bhwc", y, params["w2"].reshape(c, hid)) + params["b2"]
    return jnp.transpose(y, (0, 3, 1, 2))


if __name__ == "__main__":
    # x: (B, dim, H, W) like the PyTorch module; dim*mult hidden width.
    B, DIM, H, W, MULT = 2, 16, 16, 16, 4     # M = B*H*W = 512 rows, hid = 64

    key = jax.random.PRNGKey(0)
    kx, kp = jax.random.split(key)
    x = jax.random.normal(kx, (B, DIM, H, W), jnp.float32)
    params = init_params(kp, dim=DIM, mult=MULT)

    fwd = jax.jit(unidirectional_feed_forward)
    y = fwd(params, x)
    jax.block_until_ready(y)

    assert y.shape == (B, DIM, H, W), y.shape
    assert jnp.isfinite(y).all()

    # Sanity check against the plain-JAX reference (tolerance covers bf16 MXU operands).
    y_ref = _reference(params, x)
    rel_err = jnp.max(jnp.abs(y - y_ref)) / (jnp.max(jnp.abs(y_ref)) + 1e-6)
    assert rel_err < 3e-2, float(rel_err)

    print("KERNEL_OK")
</pallas_src>

<mosaic_0001>
module attributes {stable_mosaic.version = 11 : i64} {
  func.func @_ff_fused_kernel(%arg0: i32, %arg1: memref<256x16xbf16, #tpu.memory_space<vmem>>, %arg2: memref<16x128xbf16, #tpu.memory_space<vmem>>, %arg3: memref<1x128xf32, #tpu.memory_space<vmem>>, %arg4: memref<128x128xbf16, #tpu.memory_space<vmem>>, %arg5: memref<1x128xf32, #tpu.memory_space<vmem>>, %arg6: memref<256x128xf32, #tpu.memory_space<vmem>>) attributes {dimension_semantics = [#tpu.dimension_semantics<parallel>], iteration_bounds = array<i64: 2>, scalar_prefetch = 0 : i64, scratch_operands = 0 : i64, tpu.core_type = #tpu.core_type<tc>, window_params = [{transform_indices = @transform_0, window_bounds = array<i64: 256, 16>}, {pipeline_mode = #tpu.pipeline_mode<synchronous>, transform_indices = @transform_1, window_bounds = array<i64: 16, 128>}, {pipeline_mode = #tpu.pipeline_mode<synchronous>, transform_indices = @transform_2, window_bounds = array<i64: 1, 128>}, {pipeline_mode = #tpu.pipeline_mode<synchronous>, transform_indices = @transform_3, window_bounds = array<i64: 128, 128>}, {pipeline_mode = #tpu.pipeline_mode<synchronous>, transform_indices = @transform_4, window_bounds = array<i64: 1, 128>}, {transform_indices = @transform_5, window_bounds = array<i64: 256, 128>}]} {
    %c0 = arith.constant 0 : index
    %c0_0 = arith.constant 0 : index
    %0 = vector.load %arg1[%c0, %c0_0] : memref<256x16xbf16, #tpu.memory_space<vmem>>, vector<256x16xbf16>
    %c0_1 = arith.constant 0 : index
    %c0_2 = arith.constant 0 : index
    %1 = vector.load %arg2[%c0_1, %c0_2] : memref<16x128xbf16, #tpu.memory_space<vmem>>, vector<16x128xbf16>
    %cst = arith.constant dense<0.000000e+00> : vector<256x128xf32>
    %2 = tpu.matmul %0, %1, %cst {dimension_numbers = #tpu.dot_dimension_numbers<[1], [0], [0], [1], [0, 0, 1, 1], [], []>} : vector<256x16xbf16>, vector<16x128xbf16>, vector<256x128xf32> -> vector<256x128xf32>
    %c0_3 = arith.constant 0 : index
    %c0_4 = arith.constant 0 : index
    %3 = vector.load %arg3[%c0_3, %c0_4] : memref<1x128xf32, #tpu.memory_space<vmem>>, vector<1x128xf32>
    %4 = vector.broadcast %3 : vector<1x128xf32> to vector<256x128xf32>
    %5 = arith.addf %2, %4 : vector<256x128xf32>
    %cst_5 = arith.constant 5.000000e-01 : f32
    %6 = vector.broadcast %cst_5 : f32 to vector<256x128xf32>
    %7 = arith.mulf %6, %5 : vector<256x128xf32>
    %cst_6 = arith.constant 0.707106769 : f32
    %8 = vector.broadcast %cst_6 : f32 to vector<256x128xf32>
    %9 = arith.mulf %5, %8 : vector<256x128xf32>
    %10 = math.absf %9 : vector<256x128xf32>
    %cst_7 = arith.constant 0.327591091 : f32
    %11 = vector.broadcast %cst_7 : f32 to vector<256x128xf32>
    %12 = arith.mulf %11, %10 : vector<256x128xf32>
    %cst_8 = arith.constant 1.000000e+00 : f32
    %13 = vector.broadcast %cst_8 : f32 to vector<256x128xf32>
    %14 = arith.addf %13, %12 : vector<256x128xf32>
    %cst_9 = arith.constant 1.000000e+00 : f32
    %15 = vector.broadcast %cst_9 : f32 to vector<256x128xf32>
    %16 = arith.divf %15, %14 : vector<256x128xf32>
    %cst_10 = arith.constant 1.06140542 : f32
    %17 = vector.broadcast %cst_10 : f32 to vector<256x128xf32>
    %18 = arith.mulf %16, %17 : vector<256x128xf32>
    %cst_11 = arith.constant -1.45315206 : f32
    %19 = vector.broadcast %cst_11 : f32 to vector<256x128xf32>
    %20 = arith.addf %19, %18 : vector<256x128xf32>
    %21 = arith.mulf %16, %20 : vector<256x128xf32>
    %cst_12 = arith.constant 1.42141378 : f32
    %22 = vector.broadcast %cst_12 : f32 to vector<256x128xf32>
    %23 = arith.addf %22, %21 : vector<256x128xf32>
    %24 = arith.mulf %16, %23 : vector<256x128xf32>
    %cst_13 = arith.constant -0.284496725 : f32
    %25 = vector.broadcast %cst_13 : f32 to vector<256x128xf32>
    %26 = arith.addf %25, %24 : vector<256x128xf32>
    %27 = arith.mulf %16, %26 : vector<256x128xf32>
    %cst_14 = arith.constant 0.254829586 : f32
    %28 = vector.broadcast %cst_14 : f32 to vector<256x128xf32>
    %29 = arith.addf %28, %27 : vector<256x128xf32>
    %30 = arith.mulf %16, %29 : vector<256x128xf32>
    %31 = arith.mulf %10, %10 : vector<256x128xf32>
    %cst_15 = arith.constant 0.000000e+00 : f32
    %32 = vector.broadcast %cst_15 : f32 to vector<256x128xf32>
    %33 = arith.subf %32, %31 : vector<256x128xf32>
    %34 = math.exp %33 : vector<256x128xf32>
    %35 = arith.mulf %30, %34 : vector<256x128xf32>
    %cst_16 = arith.constant 1.000000e+00 : f32
    %36 = vector.broadcast %cst_16 : f32 to vector<256x128xf32>
    %37 = arith.subf %36, %35 : vector<256x128xf32>
    %cst_17 = arith.constant 0.000000e+00 : f32
    %38 = vector.broadcast %cst_17 : f32 to vector<256x128xf32>
    %39 = arith.cmpf olt, %9, %38 : vector<256x128xf32>
    %cst_18 = arith.constant 0.000000e+00 : f32
    %40 = vector.broadcast %cst_18 : f32 to vector<256x128xf32>
    %41 = arith.subf %40, %37 : vector<256x128xf32>
    %42 = arith.select %39, %41, %37 : vector<256x128xi1>, vector<256x128xf32>
    %cst_19 = arith.constant 1.000000e+00 : f32
    %43 = vector.broadcast %cst_19 : f32 to vector<256x128xf32>
    %44 = arith.addf %43, %42 : vector<256x128xf32>
    %45 = arith.mulf %7, %44 : vector<256x128xf32>
    %46 = arith.truncf %45 : vector<256x128xf32> to vector<256x128xbf16>
    %c0_20 = arith.constant 0 : index
    %c0_21 = arith.constant 0 : index
    %47 = vector.load %arg4[%c0_20, %c0_21] : memref<128x128xbf16, #tpu.memory_space<vmem>>, vector<128x128xbf16>
    %cst_22 = arith.constant dense<0.000000e+00> : vector<256x128xf32>
    %48 = tpu.matmul %46, %47, %cst_22 {dimension_numbers = #tpu.dot_dimension_numbers<[1], [0], [0], [1], [0, 0, 1, 1], [], []>} : vector<256x128xbf16>, vector<128x128xbf16>, vector<256x128xf32> -> vector<256x128xf32>
    %c0_23 = arith.constant 0 : index
    %c0_24 = arith.constant 0 : index
    %49 = vector.load %arg5[%c0_23, %c0_24] : memref<1x128xf32, #tpu.memory_space<vmem>>, vector<1x128xf32>
    %50 = vector.broadcast %49 : vector<1x128xf32> to vector<256x128xf32>
    %51 = arith.addf %48, %50 : vector<256x128xf32>
    %c0_25 = arith.constant 0 : index
    %c0_26 = arith.constant 0 : index
    %52 = vector.load %arg6[%c0_25, %c0_26] : memref<256x128xf32, #tpu.memory_space<vmem>>, vector<256x128xf32>
    tpu.vector_store %arg6[%c0_25, %c0_26], %51 {strides = array<i32>} : memref<256x128xf32, #tpu.memory_space<vmem>>, vector<256x128xf32>,
    return
  }
  func.func @transform_0(%arg0: i32) -> (i32, i32) {
    %c0_i32 = arith.constant 0 : i32
    %c0_i32_0 = arith.constant 0 : i32
    return %arg0, %c0_i32 : i32, i32
  }
  func.func @transform_1(%arg0: i32) -> (i32, i32) {
    %c0_i32 = arith.constant 0 : i32
    %c0_i32_0 = arith.constant 0 : i32
    %c0_i32_1 = arith.constant 0 : i32
    return %c0_i32, %c0_i32_0 : i32, i32
  }
  func.func @transform_2(%arg0: i32) -> (i32, i32) {
    %c0_i32 = arith.constant 0 : i32
    %c0_i32_0 = arith.constant 0 : i32
    %c0_i32_1 = arith.constant 0 : i32
    return %c0_i32, %c0_i32_0 : i32, i32
  }
  func.func @transform_3(%arg0: i32) -> (i32, i32) {
    %c0_i32 = arith.constant 0 : i32
    %c0_i32_0 = arith.constant 0 : i32
    %c0_i32_1 = arith.constant 0 : i32
    return %c0_i32, %c0_i32_0 : i32, i32
  }
  func.func @transform_4(%arg0: i32) -> (i32, i32) {
    %c0_i32 = arith.constant 0 : i32
    %c0_i32_0 = arith.constant 0 : i32
    %c0_i32_1 = arith.constant 0 : i32
    return %c0_i32, %c0_i32_0 : i32, i32
  }
  func.func @transform_5(%arg0: i32) -> (i32, i32) {
    %c0_i32 = arith.constant 0 : i32
    %c0_i32_0 = arith.constant 0 : i32
    return %arg0, %c0_i32 : i32, i32
  }
}

</mosaic_0001>

<bundles_post_ra>
// kernel: unidirectional_feed_forward.1
= control target key start
LH: loop header
LB: loop body
LE: loop exit
PB: predicated region body
PF: predicated region fallthrough
CT: control target
= control target key end

     0   :  { %s2159_s18 = smov 0   ;;  %s3189_s0 = inlined_call_operand.vmem [shape: bf16[512,16], index: 0, kind: input, shape index: {}]   ;;  %s3190_s1 = inlined_call_operand.vmem [shape: bf16[16,128], index: 1, kind: input, shape index: {}]   ;;  %s3191_s2 = inlined_call_operand.vmem [shape: f32[1,128], index: 2, kind: input, shape index: {}]   ;;  %s3192_s3 = inlined_call_operand.vmem [shape: bf16[128,128], index: 3, kind: input, shape index: {}]   ;;  %s3193_s4 = inlined_call_operand.vmem [shape: f32[1,128], index: 4, kind: input, shape index: {}]   ;;  %s3194_s5 = inlined_call_operand.vmem [shape: f32[512,128], index: 5, kind: output, shape index: {}]  }
   0x1 LB: > { %s1766_s19 = sadd.s32 4294967295, %s2127_s18   ;;  %p1770_p0 = scmp.ge.s32.totalorder %s2127_s18, 1  ;;  %s2127_s18 = sphi %s2159_s18, %s15_s18  }
   0x2   : > { %p188_p1 = scmp.lt.s32.totalorder %s2127_s18, 3 }
   0x4   : > { %p189_p2 = pnand %p1770_p0, %p188_p1 }
   0x6   : > { %192 = sbr.rel (%p189_p2) target bundleno = 653 (0x28d), region = 40 }
   0xb   : > { %v1967_v0 = vld [vmem:[%s3190_s1] sm:$0xff]   ;;  %s1771_s22 = sshll.u32 %s1766_s19, 5  ;;  %vm356_vm0 = vcmask 130048   ;;  %v1984_v17 = vld [vmem:[%s3192_s3 + $0x38] sm:$0xff]   ;;  %v1985_v18 = vld [vmem:[%s3192_s3 + $0x30] sm:$0xff]  }
   0xc   : > { %p217_p3 = scmp.lt.s32.totalorder %s1771_s22, 63  ;;  %1861 = vmatprep.subr.bf16.mxu0 %v1967_v0  ;;  %1943 = vmatprep.subr.bf16.mxu1 %v1984_v17  ;;  %v1986_v19 = vld [vmem:[%s3192_s3 + $0x28] sm:$0xff]   ;;  %v1987_v20 = vld [vmem:[%s3192_s3 + $0x20] sm:$0xff]   ;;  %v1988_v21 = vld [vmem:[%s3192_s3 + $0x18] sm:$0xff]  }
   0xd   : > { %1862 = vmatpush3.bf16.msra.mxu0 %v1967_v0  ;;  %1951 = vmatpush3.bf16.msra.mxu1 %v1984_v17  ;;  %v1989_v23 = vld [vmem:[%s3192_s3 + $0x10] sm:$0xff]   ;;  %v2231_v25 = vld [vmem:[%s3191_s2] ss:$0 sm:$0xff]  ;;  %v1990_v30 = vld [vmem:[%s3192_s3 + $0x8] sm:$0xff]  }
   0xe   : > { %s3335_s22 = smov (!%p217_p3, %s1771_s22), 63  ;;  %1895 = vmatprep.subr.bf16.mxu0 %v1984_v17  ;;  %1944 = vmatprep.subr.bf16.mxu1 %v1985_v18  ;;  %v1991_v57 = vld [vmem:[%s3192_s3] sm:$0xff]  }
   0xf   : > { %s1772_s23 = sshll.u32 %s3335_s22, 2  ;;  %s1774_s24 = sshll.u32 %s3335_s22, 3 }
  0x10   : > { %s2176_s26 = scalar_lea.vmem %s3189_s0, %s1772_s23  ;;  %s3120_s29 = scalar_lea.vmem %s3194_s5, %s1774_s24 }
  0x11   : > { %v1968_v1 = vld [vmem:[%s2176_s26] sm:$0xff]   ;;  %v1969_v2 = vld [vmem:[%s2176_s26 + $0x8] sm:$0xff]   ;;  %v1970_v3 = vld [vmem:[%s2176_s26 + $0x10] sm:$0xff]   ;;  %1952 = vmatpush3.bf16.msra.mxu1 %v1985_v18 }
  0x12   : > { %1863 = vmatprep.mubr.msk.bf16.mxu0 %vm356_vm0, %v1968_v1  ;;  %v1971_v4 = vld [vmem:[%s2176_s26 + $0x18] sm:$0xff]   ;;  %v1972_v5 = vld [vmem:[%s2176_s26 + $0x20] sm:$0xff]   ;;  %v1973_v6 = vld [vmem:[%s2176_s26 + $0x28] sm:$0xff]   ;;  %1945 = vmatprep.subr.bf16.mxu1 %v1986_v19 }
  0x13   : > { %1864 = vmatmul.mubr.msk.bf16.vlgmr.msra.gmra.mxu0 %vm356_vm0, %v1969_v2  ;;  %v1974_v7 = vld [vmem:[%s2176_s26 + $0x30] sm:$0xff]   ;;  %v1975_v8 = vld [vmem:[%s2176_s26 + $0x38] sm:$0xff]   ;;  %v1976_v9 = vld [vmem:[%s2176_s26 + $0x40] sm:$0xff]  }
  0x14   : > { %1867 = vmatprep.mubr.msk.bf16.mxu0 %vm356_vm0, %v1970_v3  ;;  %v1977_v10 = vld [vmem:[%s2176_s26 + $0x48] sm:$0xff]   ;;  %v1978_v11 = vld [vmem:[%s2176_s26 + $0x50] sm:$0xff]   ;;  %v1979_v12 = vld [vmem:[%s2176_s26 + $0x58] sm:$0xff]   ;;  %1896 = vmatpush3.bf16.msra.mxu0 %v1984_v17 }
  0x15   : > { %v1980_v13 = vld [vmem:[%s2176_s26 + $0x60] sm:$0xff]   ;;  %v1981_v14 = vld [vmem:[%s2176_s26 + $0x68] sm:$0xff]   ;;  %v1982_v15 = vld [vmem:[%s2176_s26 + $0x70] sm:$0xff]   ;;  %1897 = vmatprep.subr.bf16.mxu0 %v1985_v18  ;;  %1953 = vmatpush3.bf16.msra.mxu1 %v1986_v19 }
  0x16   : > { %v1983_v16 = vld [vmem:[%s2176_s26 + $0x78] sm:$0xff]   ;;  %1946 = vmatprep.subr.bf16.mxu1 %v1987_v20 }
  0x18   : > { %1898 = vmatpush3.bf16.msra.mxu0 %v1985_v18 }
  0x19   : > { %1899 = vmatprep.subr.bf16.mxu0 %v1986_v19  ;;  %1954 = vmatpush3.bf16.msra.mxu1 %v1987_v20 }
  0x1a   : > { %1947 = vmatprep.subr.bf16.mxu1 %v1988_v21 }
  0x1b   : > { %1868 = vmatmul.mubr.msk.bf16.gmra.mxu0 %vm356_vm0, %v1971_v4 }
  0x1c   : > { %1871 = vmatprep.mubr.msk.bf16.mxu0 %vm356_vm0, %v1972_v5  ;;  %1900 = vmatpush3.bf16.msra.mxu0 %v1986_v19 }
  0x1d   : > { %1901 = vmatprep.subr.bf16.mxu0 %v1987_v20  ;;  %1955 = vmatpush3.bf16.msra.mxu1 %v1988_v21 }
  0x1e   : > { %1948 = vmatprep.subr.bf16.mxu1 %v1989_v23 }
  0x20   : > { %1902 = vmatpush3.bf16.msra.mxu0 %v1987_v20 }
  0x21   : > { %1903 = vmatprep.subr.bf16.mxu0 %v1988_v21  ;;  %1956 = vmatpush3.bf16.msra.mxu1 %v1989_v23 }
  0x22   : > { %1949 = vmatprep.subr.bf16.mxu1 %v1990_v30 }
  0x23   : > { %1872 = vmatmul.mubr.msk.bf16.gmra.mxu0 %vm356_vm0, %v1973_v6 }
  0x24   : > { %1875 = vmatprep.mubr.msk.bf16.mxu0 %vm356_vm0, %v1974_v7  ;;  %1904 = vmatpush3.bf16.msra.mxu0 %v1988_v21 }
  0x25   : > { %1905 = vmatprep.subr.bf16.mxu0 %v1989_v23  ;;  %1957 = vmatpush3.bf16.msra.mxu1 %v1990_v30 }
  0x26   : > { %1950 = vmatprep.subr.bf16.mxu1 %v1991_v57 }
  0x28   : > { %1906 = vmatpush3.bf16.msra.mxu0 %v1989_v23 }
  0x29   : > { %1907 = vmatprep.subr.bf16.mxu0 %v1990_v30  ;;  %1958 = vmatpush3.bf16.msra.mxu1 %v1991_v57 }
  0x2b   : > { %1876 = vmatmul.mubr.msk.bf16.gmra.mxu0 %vm356_vm0, %v1975_v8 }
  0x2c   : > { %1879 = vmatprep.mubr.msk.bf16.mxu0 %vm356_vm0, %v1976_v9  ;;  %1908 = vmatpush3.bf16.msra.mxu0 %v1990_v30 }
  0x2d   : > { %1909 = vmatprep.subr.bf16.mxu0 %v1991_v57 }
  0x30   : > { %1910 = vmatpush3.bf16.msra.mxu0 %v1991_v57 }
  0x33   : > { %1880 = vmatmul.mubr.msk.bf16.gmra.mxu0 %vm356_vm0, %v1977_v10 }
  0x34   : > { %1883 = vmatprep.mubr.msk.bf16.mxu0 %vm356_vm0, %v1978_v11 }
  0x3b   : > { %1884 = vmatmul.mubr.msk.bf16.gmra.mxu0 %vm356_vm0, %v1979_v12 }
  0x3c   : > { %1887 = vmatprep.mubr.msk.bf16.mxu0 %vm356_vm0, %v1980_v13 }
  0x43   : > { %1888 = vmatmul.mubr.msk.bf16.gmra.mxu0 %vm356_vm0, %v1981_v14 }
  0x44   : > { %1891 = vmatprep.mubr.msk.bf16.mxu0 %vm356_vm0, %v1982_v15 }
  0x4b   : > { %1892 = vmatmul.mubr.msk.bf16.gmra.mxu0 %vm356_vm0, %v1983_v16 }
  0xd3   : > { %v1865_v22 = vpop.f32.mrf.mxu0 }
  0xd4   : > { %v2234_v27 = vadd.f32 %v1865_v22, %v2231_v25 }
  0xd5   : > { %v439_v24 = vpop.f32.mrf.mxu0 }
  0xd6   : > { %v2237_v28 = vadd.f32 %v2231_v25, %v439_v24  ;;  %v2246_v31 = vmul.f32 0.70710677, %v2234_v27  ;;  %v2318_v24 = vmul.f32 0.5, %v2234_v27 }
  0xd7   : > { %v1866_v26 = vpop.f32.mrf.mxu0 }
  0xd8   : > { %v2240_v29 = vadd.f32 %v1866_v26, %v2231_v25  ;;  %v2249_v33 = vmul.f32 0.70710677, %v2237_v28  ;;  %v632_v35 = vand.u32 2147483647, %v2246_v31  ;;  %vm1272_vm1 = vcmp.lt.f32.partialorder %v2246_v31, 0.0 }
  0xd9   : > { %v442_v32 = vpop.f32.mrf.mxu0 }
  0xda   : > { %v2252_v34 = vmul.f32 0.70710677, %v2240_v29  ;;  %v630_v37 = vand.u32 2147483647, %v2249_v33  ;;  %v2258_v39 = vadd.f32 %v2231_v25, %v442_v32  ;;  %v664_v41 = vmul.f32 0.3275911, %v632_v35 }
  0xdb   : > { %v1869_v36 = vpop.f32.mrf.mxu0  ;;  %v1080_v5 = vmul.f32 %v632_v35, %v632_v35  ;;  %vm1270_vm3 = vcmp.lt.f32.partialorder %v2249_v33, 0.0 }
  0xdc   : > { %v633_v38 = vand.u32 2147483647, %v2252_v34  ;;  %v2261_v40 = vadd.f32 %v1869_v36, %v2231_v25  ;;  %v662_v42 = vmul.f32 0.3275911, %v630_v37  ;;  %v2264_v44 = vmul.f32 0.70710677, %v2258_v39 }
  0xdd   : > { %v455_v46 = vpop.f32.mrf.mxu0  ;;  %v696_v47 = vadd.f32 1.0, %v664_v41  ;;  %v1078_v10 = vmul.f32 %v630_v37, %v630_v37  ;;  %v1112_v13 = vsub.f32 0.0, %v1080_v5  ;;  %vm1273_vm2 = vcmp.lt.f32.partialorder %v2252_v34, 0.0 }
  0xde   : > { %v665_v43 = vmul.f32 0.3275911, %v633_v38  ;;  %v2267_v45 = vmul.f32 0.70710677, %v2261_v40  ;;  %v694_v48 = vadd.f32 1.0, %v662_v42  ;;  %v456_v21 = vadd.f32 %v2231_v25, %v455_v46 }
  0xdf   : > { %v631_v50 = vand.u32 2147483647, %v2264_v44  ;;  %v1870_v52 = vpop.f32.mrf.mxu0  ;;  %1992 = vrcp.f32 %v696_v47  ;;  %v1110_v18 = vsub.f32 0.0, %v1078_v10  ;;  %v1146_v26 = vmul.f32 1.442695, %v1112_v13 }
  0xe0   : > { %v697_v49 = vadd.f32 1.0, %v665_v43  ;;  %v2271_v51 = vand.u32 2147483647, %v2267_v45  ;;  %1994 = vrcp.f32 %v694_v48  ;;  %v2277_v56 = vadd.f32 %v1870_v52, %v2231_v25 }
  0xe1   : > { %v663_v53 = vmul.f32 0.3275911, %v631_v50  ;;  %v2274_v55 = vpop.f32.mrf.mxu0  ;;  %v1081_v30 = vmul.f32 %v633_v38, %v633_v38  ;;  %v1079_v37 = vmul.f32 %v631_v50, %v631_v50  ;;  %v2330_v42 = vmul.f32 0.5, %v2237_v28 }
  0xe2   : > { %1996 = vrcp.f32 %v697_v49  ;;  %v668_v54 = vmul.f32 0.3275911, %v2271_v51  ;;  %v2283_v61 = vmul.f32 0.70710677, %v2277_v56  ;;  %v1142_v43 = vmul.f32 1.442695, %v1110_v18 }
  0xe3   : > { %v695_v58 = vadd.f32 1.0, %v663_v53  ;;  %v1873_v60 = vpop.f32.mrf.mxu0  ;;  %v2334_v38 = vmul.f32 0.5, %v2240_v29  ;;  %v2338_v48 = vmul.f32 0.70710677, %v456_v21  ;;  %v1113_v50 = vsub.f32 0.0, %v1081_v30 }
  0xe4   : > { %v700_v59 = vadd.f32 1.0, %v668_v54  ;;  %v2286_v62 = vadd.f32 %v1873_v60, %v2231_v25  ;;  %v2289_v63 = vand.u32 2147483647, %v2283_v61  ;;  %v2341_v52 = vmul.f32 0.5, %v2258_v39 }
  0xe5   : > { %1998 = vrcp.f32 %v695_v58  ;;  %v471_v0 = vpop.f32.mrf.mxu0  ;;  %3238 = vst [vmem:[#allocation2_spill] sm:$0xff] %v2338_v48  ;;  %v1111_v57 = vsub.f32 0.0, %v1079_v37  ;;  %v1084_v60 = vmul.f32 %v2271_v51, %v2271_v51  ;;  %v459_v39 = vadd.f32 %v2231_v25, %v2274_v55 }
  0xe6   : > { %2000 = vrcp.f32 %v700_v59  ;;  %v2296_v3 = vmul.f32 0.70710677, %v2286_v62  ;;  %v2301_v6 = vadd.f32 %v2231_v25, %v471_v0  ;;  %v669_v8 = vmul.f32 0.3275911, %v2289_v63 }
  0xe7   : > { %v1874_v19 = vpop.f32.mrf.mxu0  ;;  %v1116_v18 = vsub.f32 0.0, %v1084_v60  ;;  %vm1271_vm4 = vcmp.lt.f32.partialorder %v2264_v44, 0.0  ;;  %vm1276_vm5 = vcmp.lt.f32.partialorder %v2267_v45, 0.0  ;;  %vm1277_vm6 = vcmp.lt.f32.partialorder %v2283_v61, 0.0 }
  0xe8   : > { %v2308_v12 = vand.u32 2147483647, %v2296_v3  ;;  %v2311_v14 = vmul.f32 0.70710677, %v2301_v6  ;;  %v701_v16 = vadd.f32 1.0, %v669_v8  ;;  %v2327_v41 = vadd.f32 %v1874_v19, %v2231_v25 }
  0xe9   : > { %v474_v58 = vpop.f32.mrf.mxu0  ;;  %v1148_v8 = vmul.f32 1.442695, %v1113_v50  ;;  %v2364_v19 = vmul.f32 0.5, %v2277_v56  ;;  %vm1280_vm7 = vcmp.lt.f32.partialorder %v2296_v3, 0.0 }
  0xea   : > { %v672_v22 = vmul.f32 0.3275911, %v2308_v12  ;;  %v2321_v32 = vand.u32 2147483647, %v2311_v14  ;;  %2002 = vrcp.f32 %v701_v16  ;;  %v2346_v29 = vmul.f32 0.70710677, %v2327_v41 }
  0xeb   : > { %2004 = vpow2.f32 %v1146_v26  ;;  %v2357_v16 = vmul.f32 0.5, %v456_v21  ;;  %v1877_v55 = vpop.f32.mrf.mxu0  ;;  %v2371_v21 = vmul.f32 0.5, %v459_v39  ;;  %vm1278_vm8 = vcmp.lt.f32.partialorder %v2311_v14, 0.0 }
  0xec   : > { %v2291_v1 = vpop.eup %1992  ;;  %v704_v49 = vadd.f32 1.0, %v672_v22  ;;  %v670_v53 = vmul.f32 0.3275911, %v2321_v32  ;;  %2006 = vpow2.f32 %v1142_v43  ;;  %v2360_v51 = vand.u32 2147483647, %v2346_v29 }
  0xed   : > { %v2293_v2 = vpop.eup %1994  ;;  %v792_v7 = vmul.f32 1.0614054, %v2291_v1  ;;  %3239 = vst [vmem:[#allocation3_spill] sm:$0xff] %v2357_v16  ;;  %3240 = vst [vmem:[#allocation4_spill] sm:$0xff] %v2371_v21  ;;  %v2377_v37 = vadd.f32 %v1877_v55, %v2231_v25  ;;  %v1085_v43 = vmul.f32 %v2289_v63, %v2289_v63  ;;  %vm1281_vm9 = vcmp.lt.f32.partialorder %v2346_v29, 0.0 }
  0xee   : > { %v790_v9 = vmul.f32 1.0614054, %v2293_v2  ;;  %2008 = vrcp.f32 %v704_v49 }
  0xef   : > { %v2298_v4 = vpop.eup %1996  ;;  %v824_v15 = vadd.f32 -1.4531521, %v792_v7  ;;  %v634_v7 = vand.u32 2147483647, %v2338_v48 }
  0xf0   : > { %v793_v11 = vmul.f32 1.0614054, %v2298_v4  ;;  %v822_v17 = vadd.f32 -1.4531521, %v790_v9  ;;  %v2354_v9 = vmul.f32 0.5, %v2261_v40  ;;  %v2367_v40 = vadd.f32 %v2231_v25, %v474_v58 }
  0xf1   : > { %v856_v36 = vmul.f32 %v2291_v1, %v824_v15  ;;  %v1144_v15 = vmul.f32 1.442695, %v1111_v57  ;;  %v1082_v26 = vmul.f32 %v634_v7, %v634_v7 }
  0xf2   : > { %v825_v20 = vadd.f32 -1.4531521, %v793_v11  ;;  %v2315_v23 = vpop.eup %1998  ;;  %v854_v27 = vmul.f32 %v2293_v2, %v822_v17  ;;  %v702_v11 = vadd.f32 1.0, %v670_v53  ;;  %v2385_v53 = vmul.f32 0.70710677, %v2367_v40 }
  0xf3   : > { %v2323_v35 = vpop.eup %2000  ;;  %v791_v47 = vmul.f32 1.0614054, %v2315_v23  ;;  %v888_v54 = vadd.f32 1.4214138, %v856_v36  ;;  %v2374_v36 = vmul.f32 0.70710677, %v459_v39 }
  0xf4   : > { %v857_v46 = vmul.f32 %v2298_v4, %v825_v20  ;;  %v796_v28 = vmul.f32 1.0614054, %v2323_v35  ;;  %v886_v59 = vadd.f32 1.4214138, %v854_v27  ;;  %2010 = vrcp.f32 %v702_v11  ;;  %3242 = vst [vmem:[#allocation6_spill] sm:$0xff] %v2385_v53 }
  0xf5   : > { %v823_v5 = vadd.f32 -1.4531521, %v791_v47  ;;  %v920_v13 = vmul.f32 %v2291_v1, %v888_v54  ;;  %3241 = vst [vmem:[#allocation5_spill] sm:$0xff] %v2374_v36  ;;  %v666_v27 = vmul.f32 0.3275911, %v634_v7  ;;  %v487_v47 = vpop.f32.mrf.mxu0  ;;  %2012 = vpow2.f32 %v1148_v8 }
  0xf6   : > { %v889_v0 = vadd.f32 1.4214138, %v857_v46  ;;  %v828_v10 = vadd.f32 -1.4531521, %v796_v28  ;;  %v918_v17 = vmul.f32 %v2293_v2, %v886_v59  ;;  %v673_v46 = vmul.f32 0.3275911, %v2360_v51 }
  0xf7   : > { %v855_v22 = vmul.f32 %v2315_v23, %v823_v5  ;;  %v952_v56 = vadd.f32 -0.28449672, %v920_v13  ;;  %v2382_v49 = vpop.eup %2002  ;;  %v1154_v28 = vmul.f32 1.442695, %v1116_v18  ;;  %v1114_v58 = vsub.f32 0.0, %v1082_v26 }
  0xf8   : > { %v921_v20 = vmul.f32 %v2298_v4, %v889_v0  ;;  %v860_v30 = vmul.f32 %v2323_v35, %v828_v10  ;;  %v950_v50 = vadd.f32 -0.28449672, %v918_v17  ;;  %v2388_v59 = vmul.f32 0.5, %v2286_v62  ;;  %v1878_v10 = vpop.f32.mrf.mxu0  ;;  %v2005_v11 = vpop.eup %2004 }
  0xf9   : > { %v887_v57 = vadd.f32 1.4214138, %v855_v22  ;;  %2014 = vpow2.f32 %v1144_v15  ;;  %v635_v63 = vand.u32 2147483647, %v2374_v36  ;;  %v2392_v39 = vmul.f32 0.70710677, %v2377_v37  ;;  %v2007_v17 = vpop.eup %2006 }
  0xfa   : > { %v953_v54 = vadd.f32 -0.28449672, %v921_v20  ;;  %3243 = vst [vmem:[#allocation7_spill] sm:$0xff] %v2388_v59  ;;  %v892_v60 = vadd.f32 1.4214138, %v860_v30  ;;  %v984_v0 = vmul.f32 %v2291_v1, %v952_v56  ;;  %v1117_v7 = vsub.f32 0.0, %v1085_v43  ;;  %v490_v21 = vpop.f32.mrf.mxu0 }
  0xfb   : > { %3244 = vst [vmem:[#allocation8_spill] sm:$0xff] %v2392_v39  ;;  %v797_v5 = vmul.f32 1.0614054, %v2382_v49  ;;  %v705_v8 = vadd.f32 1.0, %v673_v46  ;;  %v982_v13 = vmul.f32 %v2293_v2, %v950_v50  ;;  %v698_v55 = vadd.f32 1.0, %v666_v27  ;;  %v2405_v26 = vpop.eup %2008 }
  0xfc   : > { %v2398_v62 = vand.u32 2147483647, %v2385_v53  ;;  %v2401_v15 = vadd.f32 %v2231_v25, %v487_v47  ;;  %v985_v18 = vmul.f32 %v2298_v4, %v953_v54  ;;  %v919_v20 = vmul.f32 %v2315_v23, %v887_v57 }
  0xfd   : > { %2016 = vpow2.f32 %v1154_v28  ;;  %v1150_v22 = vmul.f32 1.442695, %v1114_v58  ;;  %v924_v30 = vmul.f32 %v2323_v35, %v892_v60  ;;  %v667_v56 = vmul.f32 0.3275911, %v635_v63 }
  0xfe   : > { %v1083_v43 = vmul.f32 %v635_v63, %v635_v63  ;;  %v2409_v27 = vand.u32 2147483647, %v2392_v39  ;;  %v1016_v46 = vadd.f32 0.2548296, %v984_v0  ;;  %v829_v50 = vadd.f32 -1.4531521, %v797_v5 }
  0xff   : > { %v1156_v47 = vmul.f32 1.442695, %v1117_v7  ;;  %2018 = vrcp.f32 %v705_v8  ;;  %v1014_v16 = vadd.f32 0.2548296, %v982_v13  ;;  %v671_v54 = vmul.f32 0.3275911, %v2398_v62 }
 0x100   : > { %2020 = vrcp.f32 %v698_v55  ;;  %v2413_v28 = vmul.f32 0.70710677, %v2401_v15  ;;  %v1017_v57 = vadd.f32 0.2548296, %v985_v18  ;;  %v951_v58 = vadd.f32 -0.28449672, %v919_v20 }
 0x101   : > { %v800_v60 = vmul.f32 1.0614054, %v2405_v26  ;;  %v2417_v63 = vadd.f32 %v1878_v10, %v2231_v25  ;;  %v956_v36 = vadd.f32 -0.28449672, %v924_v30  ;;  %2022 = vpow2.f32 %v1150_v22  ;;  %v2423_v7 = vpop.eup %2010  ;;  %v1881_v22 = vpop.f32.mrf.mxu0 }
 0x102   : > { %3245 = vst [vmem:[#allocation9_spill] sm:$0xff] %v2413_v28  ;;  %v676_v0 = vmul.f32 0.3275911, %v2409_v27  ;;  %v2421_v5 = vadd.f32 %v2231_v25, %v490_v21  ;;  %v861_v8 = vmul.f32 %v2382_v49, %v829_v50  ;;  %2024 = vpow2.f32 %v1156_v47  ;;  %v2013_v48 = vpop.eup %2012 }
 0x103   : > { %v699_v13 = vadd.f32 1.0, %v667_v56  ;;  %v1115_v55 = vsub.f32 0.0, %v1083_v43  ;;  %v1048_v18 = vmul.f32 %v2291_v1, %v1016_v46  ;;  %v1046_v20 = vmul.f32 %v2293_v2, %v1014_v16 }
 0x104   : > { %3246 = vst [vmem:[#allocation10_spill] sm:$0xff] %v2421_v5  ;;  %v703_v10 = vadd.f32 1.0, %v671_v54  ;;  %v2429_v30 = vand.u32 2147483647, %v2413_v28  ;;  %v1049_v21 = vmul.f32 %v2298_v4, %v1017_v57  ;;  %v983_v39 = vmul.f32 %v2315_v23, %v951_v58 }
 0x105   : > { %v832_v53 = vadd.f32 -1.4531521, %v800_v60  ;;  %v2434_v50 = vmul.f32 0.70710677, %v2417_v63  ;;  %v988_v56 = vmul.f32 %v2323_v35, %v956_v36  ;;  %v798_v1 = vmul.f32 1.0614054, %v2423_v7 }
 0x106   : > { %v708_v43 = vadd.f32 1.0, %v676_v0  ;;  %v2439_v2 = vmul.f32 0.70710677, %v2421_v5  ;;  %v2015_v16 = vpop.eup %2014  ;;  %v893_v46 = vadd.f32 1.4214138, %v861_v8  ;;  %2026 = vrcp.f32 %v699_v13 }
 0x107   : > { %3247 = vst [vmem:[#allocation11_spill] sm:$0xff] %v2434_v50  ;;  %v1088_v4 = vmul.f32 %v2308_v12, %v2308_v12  ;;  %v2444_v47 = vadd.f32 %v1881_v22, %v2231_v25  ;;  %v2446_v54 = vmul.f32 %v2005_v11, %v1048_v18  ;;  %v2448_v57 = vmul.f32 %v2007_v17, %v1046_v20 }
 0x108   : > { %3248 = vst [vmem:[#allocation12_spill] sm:$0xff] %v2439_v2  ;;  %2028 = vrcp.f32 %v703_v10  ;;  %v674_v36 = vmul.f32 0.3275911, %v2429_v30  ;;  %v2451_v58 = vmul.f32 %v2013_v48, %v1049_v21  ;;  %v1015_v60 = vadd.f32 0.2548296, %v983_v39 }
 0x109   : > { %3249 = vst [vmem:[#allocation13_spill] sm:$0xff] %v2444_v47  ;;  %v864_v0 = vmul.f32 %v2405_v26, %v832_v53  ;;  %v2455_v8 = vand.u32 2147483647, %v2434_v50  ;;  %v1020_v12 = vadd.f32 0.2548296, %v988_v56  ;;  %2030 = vrcp.f32 %v708_v43 }
 0x10a   : > { %v2017_v13 = vpop.eup %2016  ;;  %v830_v28 = vadd.f32 -1.4531521, %v798_v1  ;;  %v2458_v11 = vand.u32 2147483647, %v2439_v2  ;;  %v925_v17 = vmul.f32 %v2382_v49, %v893_v46  ;;  %v1152_v18 = vmul.f32 1.442695, %v1115_v55  ;;  %v503_v46 = vpop.f32.mrf.mxu0 }
 0x10b   : > { %v2462_v20 = vmul.f32 0.5, %v2301_v6  ;;  %v2465_v48 = vmul.f32 0.70710677, %v2444_v47  ;;  %v1240_v39 = vsub.f32 1.0, %v2446_v54  ;;  %v1120_v10 = vsub.f32 0.0, %v1088_v4 }
 0x10c   : > { %v2467_v53 = vpop.eup %2018  ;;  %v1086_v22 = vmul.f32 %v2321_v32, %v2321_v32  ;;  %v706_v21 = vadd.f32 1.0, %v674_v36  ;;  %v1238_v55 = vsub.f32 1.0, %v2448_v57  ;;  %v1047_v6 = vmul.f32 %v2315_v23, %v1015_v60 }
 0x10d   : > { %3250 = vst [vmem:[#allocation14_spill] sm:$0xff] %v2462_v20  ;;  %3251 = vst [vmem:[#allocation15_spill] sm:$0xff] %v2465_v48  ;;  %v2473_v56 = vpop.eup %2020  ;;  %v896_v1 = vadd.f32 1.4214138, %v864_v0  ;;  %v677_v43 = vmul.f32 0.3275911, %v2455_v8  ;;  %v1052_v54 = vmul.f32 %v2323_v35, %v1020_v12  ;;  %v862_v32 = vmul.f32 %v2423_v7, %v830_v28 }
 0x10e   : > { %3252 = vst [vmem:[#allocation16_spill] sm:$0xff] %v2473_v56  ;;  %v1241_v4 = vsub.f32 1.0, %v2451_v58  ;;  %v675_v36 = vmul.f32 0.3275911, %v2458_v11  ;;  %v2484_v56 = vpop.eup %2022  ;;  %v957_v57 = vadd.f32 -0.28449672, %v925_v17  ;;  %2032 = vpow2.f32 %v1152_v18 }
 0x10f   : > { %3253 = vst [vmem:[#allocation17_spill] sm:$0xff] %v2484_v56  ;;  %v801_v23 = vmul.f32 1.0614054, %v2467_v53  ;;  %v2488_v60 = vand.u32 2147483647, %v2465_v48  ;;  %v2490_v0 = vpop.eup %2024  ;;  %v1118_v50 = vsub.f32 0.0, %v1086_v22  ;;  %2034 = vrcp.f32 %v706_v21 }
 0x110   : > { %v1162_v2 = vmul.f32 1.442695, %v1120_v10  ;;  %v2493_v35 = vadd.f32 %v2231_v25, %v503_v46  ;;  %v1304_v28 = vsub.f32 0.0, %v1240_v39  ;;  %v1207_v58 = vmul.f32 %v2015_v16, %v1047_v6 }
 0x111   : > { %v928_v12 = vmul.f32 %v2405_v26, %v896_v1  ;;  %v709_v56 = vadd.f32 1.0, %v677_v43  ;;  %v1305_v17 = vsub.f32 0.0, %v1241_v4  ;;  %v1212_v18 = vmul.f32 %v2017_v13, %v1052_v54 }
 0x112   : > { %v894_v20 = vadd.f32 1.4214138, %v862_v32  ;;  %v707_v47 = vadd.f32 1.0, %v675_v36  ;;  %v1302_v5 = vsub.f32 0.0, %v1238_v55  ;;  %v989_v48 = vmul.f32 %v2382_v49, %v957_v57 }
 0x113   : > { %v833_v59 = vadd.f32 -1.4531521, %v801_v23  ;;  %v680_v10 = vmul.f32 0.3275911, %v2488_v60  ;;  %v2498_v22 = vpop.eup %2026  ;;  %2036 = vpow2.f32 %v1162_v2  ;;  %v1158_v21 = vmul.f32 1.442695, %v1118_v50 }
 0x114   : > { %v1089_v16 = vmul.f32 %v2360_v51, %v2360_v51  ;;  %v2504_v6 = vmul.f32 0.70710677, %v2493_v35  ;;  %v1336_v1 = vsel %vm1272_vm1, %v1304_v28, %v1240_v39  ;;  %v1239_v43 = vsub.f32 1.0, %v1207_v58 }
 0x115   : > { %v2506_v13 = vpop.eup %2028  ;;  %v960_v46 = vadd.f32 -0.28449672, %v928_v12  ;;  %2038 = vrcp.f32 %v709_v56  ;;  %v1337_v2 = vsel %vm1273_vm2, %v1305_v17, %v1241_v4  ;;  %v1244_v50 = vsub.f32 1.0, %v1212_v18  ;;  %v1882_v4 = vpop.f32.mrf.mxu0 }
 0x116   : > { %v926_v54 = vmul.f32 %v2423_v7, %v894_v20  ;;  %2040 = vrcp.f32 %v707_v47  ;;  %v2514_v51 = vpop.eup %2030  ;;  %v1334_v32 = vsel %vm1270_vm3, %v1302_v5, %v1238_v55  ;;  %v1021_v36 = vadd.f32 0.2548296, %v989_v48 }
 0x117   : > { %v865_v31 = vmul.f32 %v2467_v53, %v833_v59  ;;  %v712_v39 = vadd.f32 1.0, %v680_v10  ;;  %v1368_v57 = vadd.f32 1.0, %v1336_v1  ;;  %v1121_v23 = vsub.f32 0.0, %v1089_v16  ;;  %v506_v1 = vpop.f32.mrf.mxu0 }
 0x118   : > { %v799_v56 = vmul.f32 1.0614054, %v2506_v13  ;;  %v2521_v34 = vand.u32 2147483647, %v2504_v6  ;;  %v1369_v28 = vadd.f32 1.0, %v1337_v2  ;;  %v1303_v20 = vsub.f32 0.0, %v1239_v43 }
 0x119   : > { %v992_v47 = vmul.f32 %v2405_v26, %v960_v46  ;;  %2042 = vpow2.f32 %v1158_v21  ;;  %v1366_v58 = vadd.f32 1.0, %v1334_v32  ;;  %v1308_v33 = vsub.f32 0.0, %v1244_v50 }
 0x11a   : > { %v958_v5 = vadd.f32 -0.28449672, %v926_v54  ;;  %v804_v48 = vmul.f32 1.0614054, %v2514_v51  ;;  %v1053_v59 = vmul.f32 %v2382_v49, %v1021_v36  ;;  %v2527_v55 = vmul.f32 0.5, %v2327_v41 }
 0x11b   : > { %v897_v12 = vadd.f32 1.4214138, %v865_v31  ;;  %2044 = vrcp.f32 %v712_v39  ;;  %v2529_v17 = vpop.eup %2032  ;;  %v2532_v18 = vmul.f32 %v1368_v57, %v2318_v24  ;;  %v1164_v10 = vmul.f32 1.442695, %v1121_v23 }
 0x11c   : > { %v831_v16 = vadd.f32 -1.4531521, %v799_v56  ;;  %v678_v21 = vmul.f32 0.3275911, %v2521_v34  ;;  %v2535_v46 = vpop.eup %2034  ;;  %v2538_v2 = vmul.f32 %v1369_v28, %v2334_v38  ;;  %v1335_v41 = vsel %vm1271_vm4, %v1303_v20, %v1239_v43 }
 0x11d   : > { %v1024_v49 = vadd.f32 0.2548296, %v992_v47  ;;  %v2543_v54 = vadd.f32 %v1882_v4, %v2231_v25  ;;  %v2546_v24 = vmul.f32 %v1366_v58, %v2330_v42  ;;  %v1340_v32 = vsel %vm1276_vm5, %v1308_v33, %v1244_v50 }
 0x11e   : > { %v990_v36 = vmul.f32 %v2423_v7, %v958_v5  ;;  %v836_v31 = vadd.f32 -1.4531521, %v804_v48  ;;  %v1213_v39 = vmul.f32 %v2490_v0, %v1053_v59  ;;  %v929_v38 = vmul.f32 %v2467_v53, %v897_v12 }
 0x11f   : > { %v1087_v44 = vmul.f32 %v2398_v62, %v2398_v62  ;;  %v2556_v43 = vadd.f32 %v2231_v25, %v506_v1  ;;  %v1367_v57 = vadd.f32 1.0, %v1335_v41  ;;  %v863_v42 = vmul.f32 %v2506_v13, %v831_v16 }
 0x120   : > { %v802_v23 = vmul.f32 1.0614054, %v2535_v46  ;;  %v710_v45 = vadd.f32 1.0, %v678_v21  ;;  %v2037_v50 = vpop.eup %2036  ;;  %v1056_v0 = vmul.f32 %v2405_v26, %v1024_v49  ;;  %2046 = vpow2.f32 %v1164_v10 }
 0x121   : > { %v2564_v4 = vmul.f32 0.70710677, %v2543_v54  ;;  %v1372_v28 = vadd.f32 1.0, %v1340_v32  ;;  %v1022_v20 = vadd.f32 0.2548296, %v990_v36  ;;  %v2570_v47 = vmul.f32 0.5, %v2367_v40 }
 0x122   : > { %v2566_v62 = vpop.eup %2038  ;;  %v868_v58 = vmul.f32 %v2514_v51, %v836_v31  ;;  %v1245_v5 = vsub.f32 1.0, %v1213_v39  ;;  %v961_v48 = vadd.f32 -0.28449672, %v929_v38  ;;  %v1119_v26 = vsub.f32 0.0, %v1087_v44 }
 0x123   : > { %3254 = vst [vmem:[#allocation18_spill] sm:$0xff] %v2564_v4  ;;  %v2573_v33 = vpop.eup %2040  ;;  %v2576_v59 = vmul.f32 0.70710677, %v2556_v43  ;;  %v895_v12 = vadd.f32 1.4214138, %v863_v42  ;;  %v1092_v10 = vmul.f32 %v2409_v27, %v2409_v27  ;;  %2048 = vrcp.f32 %v710_v45 }
 0x124   : > { %v834_v16 = vadd.f32 -1.4531521, %v802_v23  ;;  %v2581_v21 = vmul.f32 %v1367_v57, %v2341_v52  ;;  %v1216_v40 = vmul.f32 %v2037_v50, %v1056_v0  ;;  %v805_v1 = vmul.f32 1.0614054, %v2566_v62 }
 0x125   : > { %v2585_v41 = vand.u32 2147483647, %v2564_v4  ;;  %v1054_v32 = vmul.f32 %v2423_v7, %v1022_v20  ;;  %v2589_v36 = vmul.f32 0.5, %v2377_v37  ;;  %v900_v31 = vadd.f32 1.4214138, %v868_v58 }
 0x126   : > { %v2043_v49 = vpop.eup %2042  ;;  %v803_v27 = vmul.f32 1.0614054, %v2573_v33  ;;  %v2593_v39 = vmul.f32 %v1372_v28, %v2354_v9  ;;  %v1309_v52 = vsub.f32 0.0, %v1245_v5  ;;  %v993_v38 = vmul.f32 %v2467_v53, %v961_v48 }
 0x127   : > { %v2597_v44 = vand.u32 2147483647, %v2576_v59  ;;  %v927_v7 = vmul.f32 %v2506_v13, %v895_v12  ;;  %v1160_v37 = vmul.f32 1.442695, %v1119_v26  ;;  %v1124_v42 = vsub.f32 0.0, %v1092_v10 }
 0x128   : > { %v2599_v57 = vpop.eup %2044  ;;  %v866_v23 = vmul.f32 %v2535_v46, %v834_v16  ;;  %v1248_v45 = vsub.f32 1.0, %v1216_v40  ;;  %v1090_v9 = vmul.f32 %v2429_v30, %v2429_v30  ;;  %v837_v50 = vadd.f32 -1.4531521, %v805_v1 }
 0x129   : > { %v681_v0 = vmul.f32 0.3275911, %v2585_v41  ;;  %v1214_v28 = vmul.f32 %v2043_v49, %v1054_v32  ;;  %v932_v20 = vmul.f32 %v2514_v51, %v900_v31  ;;  %v2609_v58 = vmul.f32 0.5, %v2401_v15 }
 0x12a   : > { %v835_v48 = vadd.f32 -1.4531521, %v803_v27  ;;  %v1341_v26 = vsel %vm1277_vm6, %v1309_v52, %v1245_v5  ;;  %v1025_v12 = vadd.f32 0.2548296, %v993_v38  ;;  %v808_v10 = vmul.f32 1.0614054, %v2599_v57  ;;  %v1885_v52 = vpop.f32.mrf.mxu0 }
 0x12b   : > { %v679_v16 = vmul.f32 0.3275911, %v2597_v44  ;;  %v959_v40 = vadd.f32 -0.28449672, %v927_v7  ;;  %2050 = vpow2.f32 %v1160_v37  ;;  %v1170_v30 = vmul.f32 1.442695, %v1124_v42 }
 0x12c   : > { %v898_v1 = vadd.f32 1.4214138, %v866_v23  ;;  %v1312_v56 = vsub.f32 0.0, %v1248_v45  ;;  %v1122_v49 = vsub.f32 0.0, %v1090_v9  ;;  %v869_v32 = vmul.f32 %v2566_v62, %v837_v50 }
 0x12d   : > { %v713_v31 = vadd.f32 1.0, %v681_v0  ;;  %v2047_v15 = vpop.eup %2046  ;;  %v1246_v4 = vsub.f32 1.0, %v1214_v28  ;;  %v964_v61 = vadd.f32 -0.28449672, %v932_v20  ;;  %v1093_v5 = vmul.f32 %v2455_v8, %v2455_v8 }
 0x12e   : > { %v867_v27 = vmul.f32 %v2573_v33, %v835_v48  ;;  %v1057_v38 = vmul.f32 %v2467_v53, %v1025_v12  ;;  %v1091_v7 = vmul.f32 %v2458_v11, %v2458_v11  ;;  %v840_v37 = vadd.f32 -1.4531521, %v808_v10  ;;  %v519_v10 = vpop.f32.mrf.mxu0 }
 0x12f   : > { %v711_v42 = vadd.f32 1.0, %v679_v16  ;;  %v1373_v23 = vadd.f32 1.0, %v1341_v26  ;;  %v991_v9 = vmul.f32 %v2506_v13, %v959_v40  ;;  %2052 = vpow2.f32 %v1170_v30 }
 0x130   : > { %v930_v50 = vmul.f32 %v2535_v46, %v898_v1  ;;  %v2625_v0 = vpop.eup %2048  ;;  %v1344_v8 = vsel %vm1280_vm7, %v1312_v56, %v1248_v45  ;;  %v1166_v28 = vmul.f32 1.442695, %v1122_v49  ;;  %v901_v20 = vadd.f32 1.4214138, %v869_v32 }
 0x131   : > { %2054 = vrcp.f32 %v713_v31  ;;  %v1310_v53 = vsub.f32 0.0, %v1246_v4  ;;  %v996_v48 = vmul.f32 %v2514_v51, %v964_v61  ;;  %v1125_v11 = vsub.f32 0.0, %v1093_v5  ;;  %v2646_v5 = vpop.f32.mrf.mxu0 }
 0x132   : > { %v899_v12 = vadd.f32 1.4214138, %v867_v27  ;;  %v1217_v26 = vmul.f32 %v2047_v15, %v1057_v38  ;;  %v1123_v16 = vsub.f32 0.0, %v1091_v7  ;;  %v872_v40 = vmul.f32 %v2599_v57, %v840_v37 }
 0x133   : > { %2056 = vrcp.f32 %v711_v42  ;;  %v2632_v30 = vmul.f32 %v1373_v23, %v2364_v19  ;;  %v1023_v1 = vadd.f32 0.2548296, %v991_v9  ;;  %v962_v3 = vadd.f32 -0.28449672, %v930_v50  ;;  %v3256_v50 = vld [vmem:[#allocation7_spill] sm:$0xff] }
 0x134   : > { %v806_v56 = vmul.f32 1.0614054, %v2625_v0  ;;  %v1376_v45 = vadd.f32 1.0, %v1344_v8  ;;  %v933_v49 = vmul.f32 %v2566_v62, %v901_v20  ;;  %v1096_v32 = vmul.f32 %v2488_v60, %v2488_v60 }
 0x135   : > { %v2639_v31 = vadd.f32 %v1885_v52, %v2231_v25  ;;  %v1028_v15 = vadd.f32 0.2548296, %v996_v48  ;;  %2058 = vpow2.f32 %v1166_v28  ;;  %v2643_v19 = vmul.f32 0.5, %v2417_v63 }
 0x136   : > { %v931_v61 = vmul.f32 %v2573_v33, %v899_v12  ;;  %v1342_v27 = vsel %vm1278_vm8, %v1310_v53, %v1246_v4  ;;  %v1249_v38 = vsub.f32 1.0, %v1217_v26  ;;  %v1172_v7 = vmul.f32 1.442695, %v1125_v11  ;;  %v3258_v53 = vld [vmem:[#allocation10_spill] sm:$0xff]  ;;  %v522_v11 = vpop.f32.mrf.mxu0 }
 0x137   : > { %3255 = vst [vmem:[#allocation19_spill] sm:$0xff] %v2639_v31  ;;  %v904_v60 = vadd.f32 1.4214138, %v872_v40  ;;  %v1055_v52 = vmul.f32 %v2506_v13, %v1023_v1  ;;  %v994_v37 = vmul.f32 %v2535_v46, %v962_v3  ;;  %v1168_v42 = vmul.f32 1.442695, %v1123_v16 }
 0x138   : > { %v838_v23 = vadd.f32 -1.4531521, %v806_v56  ;;  %v2051_v9 = vpop.eup %2050  ;;  %v2653_v63 = vmul.f32 %v1376_v45, %v3256_v50  ;;  %v965_v8 = vadd.f32 -0.28449672, %v933_v49  ;;  %v1128_v28 = vsub.f32 0.0, %v1096_v32  ;;  %v3259_v45 = vld [vmem:[#allocation13_spill] sm:$0xff] }
 0x139   : > { %v2656_v20 = vmul.f32 0.70710677, %v2639_v31  ;;  %v1374_v14 = vadd.f32 1.0, %v1342_v27  ;;  %v1060_v4 = vmul.f32 %v2514_v51, %v1028_v15  ;;  %v2660_v48 = vmul.f32 0.5, %v3258_v53  ;;  %v3261_v27 = vld [vmem:[#allocation14_spill] sm:$0xff] }
 0x13a   : > { %v963_v13 = vadd.f32 -0.28449672, %v931_v61  ;;  %v1313_v12 = vsub.f32 0.0, %v1249_v38  ;;  %2060 = vpow2.f32 %v1172_v7  ;;  %v936_v26 = vmul.f32 %v2599_v57, %v904_v60 }
 0x13b   : > { %3257 = vst [vmem:[#allocation7_spill] sm:$0xff] %v2656_v20  ;;  %v1094_v16 = vmul.f32 %v2521_v34, %v2521_v34  ;;  %v1215_v40 = vmul.f32 %v2051_v9, %v1055_v52  ;;  %v1026_v1 = vadd.f32 0.2548296, %v994_v37  ;;  %2062 = vpow2.f32 %v1168_v42  ;;  %v2684_v37 = vpop.f32.mrf.mxu0 }
 0x13c   : > { %v870_v3 = vmul.f32 %v2625_v0, %v838_v23  ;;  %v2053_v56 = vpop.eup %2052  ;;  %v997_v51 = vmul.f32 %v2566_v62, %v965_v8  ;;  %v2668_v49 = vmul.f32 0.5, %v3259_v45  ;;  %v1178_v32 = vmul.f32 1.442695, %v1128_v28  ;;  %v3262_v23 = vld [vmem:[#allocation6_spill] sm:$0xff] }
 0x13d   : > { %v2671_v15 = vand.u32 2147483647, %v2656_v20  ;;  %v2676_v7 = vmul.f32 %v1374_v14, %v3261_v27  ;;  %v2678_v34 = vmul.f32 %v2053_v56, %v1060_v4  ;;  %v995_v60 = vmul.f32 %v2573_v33, %v963_v13 }
 0x13e   : > { %3260 = vst [vmem:[#allocation10_spill] sm:$0xff] %v2668_v49  ;;  %v2673_v61 = vpop.eup %2054  ;;  %v2682_v52 = vmul.f32 0.5, %v2493_v35  ;;  %v1345_v42 = vsel %vm1281_vm9, %v1313_v12, %v1249_v38  ;;  %vm1279_vm10 = vcmp.lt.f32.partialorder %v3262_v23, 0.0  ;;  %v968_v9 = vadd.f32 -0.28449672, %v936_v26 }
 0x13f   : > { %v1126_v50 = vsub.f32 0.0, %v1094_v16  ;;  %v2690_v8 = vadd.f32 %v2231_v25, %v519_v10  ;;  %v1247_v14 = vsub.f32 1.0, %v1215_v40  ;;  %v1058_v4 = vmul.f32 %v2535_v46, %v1026_v1  ;;  %v3263_v10 = vld [vmem:[#allocation8_spill] sm:$0xff]  ;;  %v535_v46 = vpop.f32.mrf.mxu0 }
 0x140   : > { %v2692_v28 = vpop.eup %2056  ;;  %v902_v53 = vadd.f32 1.4214138, %v870_v3  ;;  %v2696_v35 = vadd.f32 %v2231_v25, %v522_v11  ;;  %v1029_v13 = vadd.f32 0.2548296, %v997_v51  ;;  %2064 = vpow2.f32 %v1178_v32 }
 0x141   : > { %v809_v29 = vmul.f32 1.0614054, %v2673_v61  ;;  %v684_v38 = vmul.f32 0.3275911, %v2671_v15  ;;  %v1377_v12 = vadd.f32 1.0, %v1345_v42  ;;  %v1252_v26 = vsub.f32 1.0, %v2678_v34 }
 0x142   : > { %vm1284_vm11 = vcmp.lt.f32.partialorder %v3263_v10, 0.0  ;;  %v1027_v16 = vadd.f32 0.2548296, %v995_v60  ;;  %v1097_v40 = vmul.f32 %v2585_v41, %v2585_v41  ;;  %v2059_v1 = vpop.eup %2058  ;;  %v1000_v25 = vmul.f32 %v2599_v57, %v968_v9 }
 0x143   : > { %v2706_v11 = vmul.f32 0.5, %v2543_v54  ;;  %v807_v3 = vmul.f32 1.0614054, %v2692_v28  ;;  %v2710_v56 = vmul.f32 0.70710677, %v2690_v8  ;;  %v1311_v51 = vsub.f32 0.0, %v1247_v14 }
 0x144   : > { %v1218_v45 = vmul.f32 %v2059_v1, %v1058_v4  ;;  %v934_v32 = vmul.f32 %v2625_v0, %v902_v53  ;;  %v2714_v27 = vmul.f32 0.70710677, %v2696_v35  ;;  %v1061_v41 = vmul.f32 %v2566_v62, %v1029_v13  ;;  %v3267_v53 = vld [vmem:[#allocation9_spill] sm:$0xff] }
 0x145   : > { %3264 = vst [vmem:[#allocation13_spill] sm:$0xff] %v2706_v11  ;;  %v1174_v34 = vmul.f32 1.442695, %v1126_v50  ;;  %v841_v60 = vadd.f32 -1.4531521, %v809_v29  ;;  %v716_v42 = vadd.f32 1.0, %v684_v38  ;;  %v1059_v54 = vmul.f32 %v2573_v33, %v1027_v16  ;;  %v2721_v11 = vpop.f32.mrf.mxu0 }
 0x146   : > { %v1316_v9 = vsub.f32 0.0, %v1252_v26  ;;  %v1129_v31 = vsub.f32 0.0, %v1097_v40  ;;  %v2719_v49 = vmul.f32 0.5, %v2556_v43  ;;  %v2724_v4 = vmul.f32 %v1377_v12, %v2527_v55  ;;  %v2739_v12 = vld [vmem:[%s3191_s2] ss:$0 sm:$0xff] }
 0x147   : > { %vm1282_vm12 = vcmp.lt.f32.partialorder %v3267_v53, 0.0  ;;  %v1032_v1 = vadd.f32 0.2548296, %v1000_v25  ;;  %v839_v20 = vadd.f32 -1.4531521, %v807_v3  ;;  %v2061_v50 = vpop.eup %2060  ;;  %v1343_v33 = vsel %vm1279_vm10, %v1311_v51, %v1247_v14  ;;  %v538_v3 = vpop.f32.mrf.mxu0 }
 0x148   : > { %3265 = vst [vmem:[#allocation14_spill] sm:$0xff] %v2719_v49  ;;  %3266 = vst [vmem:[#allocation6_spill] sm:$0xff] %v2724_v4  ;;  %v2728_v62 = vand.u32 2147483647, %v2710_v56  ;;  %v1250_v13 = vsub.f32 1.0, %v1218_v45  ;;  %v2063_v38 = vpop.eup %2062  ;;  %v1221_v16 = vmul.f32 %v2061_v50, %v1061_v41  ;;  %v873_v55 = vmul.f32 %v2673_v61, %v841_v60 }
 0x149   : > { %v966_v29 = vadd.f32 -0.28449672, %v934_v32  ;;  %v2733_v43 = vand.u32 2147483647, %v2714_v27  ;;  %2066 = vrcp.f32 %v716_v42  ;;  %v2743_v40 = vadd.f32 %v2739_v12, %v2646_v5  ;;  %v3269_v5 = vld [vmem:[#allocation11_spill] sm:$0xff]  ;;  %v2770_v4 = vpop.f32.mrf.mxu0 }
 0x14a   : > { %v1219_v23 = vmul.f32 %v2063_v38, %v1059_v54  ;;  %2068 = vpow2.f32 %v1174_v34  ;;  %v1180_v14 = vmul.f32 1.442695, %v1129_v31  ;;  %v1095_v25 = vmul.f32 %v2597_v44, %v2597_v44  ;;  %v3270_v44 = vld [vmem:[#allocation12_spill] sm:$0xff] }
 0x14b   : > { %3268 = vst [vmem:[#allocation8_spill] sm:$0xff] %v2743_v40  ;;  %v1348_v51 = vsel %vm1284_vm11, %v1316_v9, %v1252_v26  ;;  %v1064_v45 = vmul.f32 %v2599_v57, %v1032_v1  ;;  %v871_v32 = vmul.f32 %v2692_v28, %v839_v20  ;;  %v682_v41 = vmul.f32 0.3275911, %v2728_v62 }
 0x14c   : > { %v1375_v60 = vadd.f32 1.0, %v1343_v33  ;;  %v1314_v42 = vsub.f32 0.0, %v1250_v13  ;;  %vm1285_vm13 = vcmp.lt.f32.partialorder %v3269_v5, 0.0  ;;  %v998_v34 = vmul.f32 %v2625_v0, %v966_v29 }
 0x14d   : > { %v683_v31 = vmul.f32 0.3275911, %v2733_v43  ;;  %v1253_v54 = vsub.f32 1.0, %v1221_v16  ;;  %vm1283_vm14 = vcmp.lt.f32.partialorder %v3270_v44, 0.0  ;;  %v905_v50 = vadd.f32 1.4214138, %v873_v55  ;;  %v2065_v20 = vpop.eup %2064 }
 0x14e   : > { %v2757_v26 = vmul.f32 0.70710677, %v2743_v40  ;;  %v2760_v57 = vadd.f32 %v2739_v12, %v538_v3  ;;  %v1380_v10 = vadd.f32 1.0, %v1348_v51  ;;  %v1251_v9 = vsub.f32 1.0, %v1219_v23 }
 0x14f   : > { %v1127_v1 = vsub.f32 0.0, %v1095_v25  ;;  %v2763_v33 = vadd.f32 %v2739_v12, %v535_v46  ;;  %v1224_v29 = vmul.f32 %v2065_v20, %v1064_v45  ;;  %2070 = vpow2.f32 %v1180_v14  ;;  %v3276_v45 = vld [vmem:[#allocation15_spill] sm:$0xff] }
 0x150   : > { %3271 = vst [vmem:[#allocation9_spill] sm:$0xff] %v2757_v26  ;;  %3272 = vst [vmem:[#allocation11_spill] sm:$0xff] %v2760_v57  ;;  %v903_v38 = vadd.f32 1.4214138, %v871_v32  ;;  %v714_v16 = vadd.f32 1.0, %v682_v41  ;;  %v2766_v49 = vmul.f32 %v1375_v60, %v2570_v47  ;;  %v1346_v55 = vsel %vm1282_vm12, %v1314_v42, %v1250_v13 }
 0x151   : > { %3273 = vst [vmem:[#allocation12_spill] sm:$0xff] %v2763_v33  ;;  %v1030_v40 = vadd.f32 0.2548296, %v998_v34  ;;  %v715_v3 = vadd.f32 1.0, %v683_v31  ;;  %v1317_v51 = vsub.f32 0.0, %v1253_v54  ;;  %v937_v23 = vmul.f32 %v2673_v61, %v905_v50  ;;  %v551_v31 = vpop.f32.mrf.mxu0 }
 0x152   : > { %v2774_v46 = vand.u32 2147483647, %v2757_v26  ;;  %v2777_v14 = vmul.f32 0.70710677, %v2760_v57  ;;  %v2780_v25 = vmul.f32 %v1380_v10, %v2589_v36  ;;  %v1315_v47 = vsub.f32 0.0, %v1251_v9 }
 0x153   : > { %vm1288_vm15 = vcmp.lt.f32.partialorder %v3276_v45, 0.0  ;;  %v1176_v53 = vmul.f32 1.442695, %v1127_v1  ;;  %v2784_v13 = vmul.f32 0.70710677, %v2763_v33  ;;  %v1256_v32 = vsub.f32 1.0, %v1224_v29 }
 0x154   : > { %3274 = vst [vmem:[#allocation20_spill] sm:$0xff] %v2777_v14  ;;  %3275 = vst [vmem:[#allocation21_spill] sm:$0xff] %v2780_v25  ;;  %v935_v41 = vmul.f32 %v2692_v28, %v903_v38  ;;  %2072 = vrcp.f32 %v714_v16  ;;  %v2789_v60 = vadd.f32 %v2739_v12, %v2684_v37  ;;  %v1378_v42 = vadd.f32 1.0, %v1346_v55 }
 0x155   : > { %3277 = vst [vmem:[#allocation15_spill] sm:$0xff] %v2784_v13  ;;  %v1062_v34 = vmul.f32 %v2625_v0, %v1030_v40  ;;  %v1100_v36 = vmul.f32 %v2671_v15, %v2671_v15  ;;  %2074 = vrcp.f32 %v715_v3  ;;  %v1349_v50 = vsel %vm1285_vm13, %v1317_v51, %v1253_v54 }
 0x156   : > { %3278 = vst [vmem:[#allocation22_spill] sm:$0xff] %v2789_v60  ;;  %v969_v20 = vadd.f32 -0.28449672, %v937_v23  ;;  %v685_v10 = vmul.f32 0.3275911, %v2774_v46  ;;  %v2800_v29 = vpop.eup %2066  ;;  %v1347_v37 = vsel %vm1283_vm14, %v1315_v47, %v1251_v9  ;;  %2076 = vpow2.f32 %v1176_v53  ;;  %v1894_v53 = vpop.f32.mrf.mxu0 }
 0x157   : > { %v2798_v1 = vand.u32 2147483647, %v2777_v14  ;;  %v2805_v0 = vand.u32 2147483647, %v2784_v13  ;;  %v2809_v15 = vadd.f32 %v2739_v12, %v2721_v11  ;;  %v2069_v40 = vpop.eup %2068  ;;  %v1320_v5 = vsub.f32 0.0, %v1256_v32 }
 0x158   : > { %v967_v54 = vadd.f32 -0.28449672, %v935_v41  ;;  %v2812_v38 = vmul.f32 0.70710677, %v2789_v60  ;;  %v2815_v16 = vadd.f32 %v2739_v12, %v551_v31  ;;  %v2818_v44 = vmul.f32 %v1378_v42, %v2609_v58 }
 0x159   : > { %3279 = vst [vmem:[#allocation23_spill] sm:$0xff] %v2809_v15  ;;  %v1381_v9 = vadd.f32 1.0, %v1349_v50  ;;  %v1222_v55 = vmul.f32 %v2069_v40, %v1062_v34  ;;  %v1132_v3 = vsub.f32 0.0, %v1100_v36  ;;  %v1001_v51 = vmul.f32 %v2673_v61, %v969_v20 }
 0x15a   : > { %3280 = vst [vmem:[#allocation24_spill] sm:$0xff] %v2812_v38  ;;  %3281 = vst [vmem:[#allocation25_spill] sm:$0xff] %v2815_v16  ;;  %v812_v11 = vmul.f32 1.0614054, %v2800_v29  ;;  %v717_v23 = vadd.f32 1.0, %v685_v10  ;;  %v1379_v41 = vadd.f32 1.0, %v1347_v37  ;;  %v1352_v42 = vsel %vm1288_vm15, %v1320_v5, %v1256_v32 }
 0x15b   : > { %v687_v47 = vmul.f32 0.3275911, %v2798_v1  ;;  %v2824_v60 = vmul.f32 0.5, %v2690_v8  ;;  %v686_v31 = vmul.f32 0.3275911, %v2805_v0  ;;  %v999_v34 = vmul.f32 %v2692_v28, %v967_v54  ;;  %v554_v54 = vpop.f32.mrf.mxu0 }
 0x15c   : > { %v2828_v58 = vmul.f32 0.70710677, %v2809_v15  ;;  %v2834_v36 = vand.u32 2147483647, %v2812_v38  ;;  %v2837_v50 = vmul.f32 0.70710677, %v2815_v16  ;;  %v2071_v20 = vpop.eup %2070  ;;  %v2840_v8 = vmul.f32 %v1381_v9, %v2643_v19 }
 0x15d   : > { %3282 = vst [vmem:[#allocation26_spill] sm:$0xff] %v2824_v60  ;;  %v1254_v10 = vsub.f32 1.0, %v1222_v55  ;;  %vm1286_vm0 = vcmp.lt.f32.partialorder %v2504_v6, 0.0  ;;  %v1186_v37 = vmul.f32 1.442695, %v1132_v3  ;;  %v1098_v45 = vmul.f32 %v2728_v62, %v2728_v62 }
 0x15e   : > { %3283 = vst [vmem:[#allocation27_spill] sm:$0xff] %v2828_v58  ;;  %3284 = vst [vmem:[#allocation28_spill] sm:$0xff] %v2837_v50  ;;  %v1033_v32 = vadd.f32 0.2548296, %v1001_v51  ;;  %v844_v40 = vadd.f32 -1.4531521, %v812_v11  ;;  %2078 = vrcp.f32 %v717_v23  ;;  %v2851_v19 = vadd.f32 %v2739_v12, %v1894_v53 }
 0x15f   : > { %3285 = vst [vmem:[#allocation29_spill] sm:$0xff] %v2840_v8  ;;  %v719_v5 = vadd.f32 1.0, %v687_v47  ;;  %v2845_v15 = vadd.f32 1.0, %v1352_v42  ;;  %v718_v16 = vadd.f32 1.0, %v686_v31  ;;  %v2848_v38 = vand.u32 2147483647, %v2828_v58 }
 0x160   : > { %3287 = vst [vmem:[#allocation31_spill] sm:$0xff] %v2851_v19  ;;  %v2854_v9 = vmul.f32 %v1379_v41, %v2660_v48  ;;  %v1031_v55 = vadd.f32 0.2548296, %v999_v34  ;;  %v688_v62 = vmul.f32 0.3275911, %v2834_v36  ;;  %v1318_v11 = vsub.f32 0.0, %v1254_v10 }
 0x161   : > { %3286 = vst [vmem:[#allocation30_spill] sm:$0xff] %v2845_v15  ;;  %v2858_v3 = vand.u32 2147483647, %v2837_v50  ;;  %v2860_v51 = vpop.eup %2072  ;;  %v1130_v23 = vsub.f32 0.0, %v1098_v45  ;;  %v2864_v47 = vadd.f32 %v2739_v12, %v2770_v4  ;;  %v2867_v53 = vadd.f32 %v2739_v12, %v554_v54 }
 0x162   : > { %v2869_v31 = vpop.eup %2074  ;;  %v1065_v48 = vmul.f32 %v2673_v61, %v1033_v32  ;;  %v876_v41 = vmul.f32 %v2800_v29, %v844_v40  ;;  %v1101_v42 = vmul.f32 %v2774_v46, %v2774_v46  ;;  %2080 = vrcp.f32 %v719_v5 }
 0x163   : > { %3288 = vst [vmem:[#allocation32_spill] sm:$0xff] %v2864_v47  ;;  %3289 = vst [vmem:[#allocation33_spill] sm:$0xff] %v2867_v53  ;;  %2082 = vrcp.f32 %v718_v16  ;;  %v689_v34 = vmul.f32 0.3275911, %v2848_v38  ;;  %v2877_v45 = vmul.f32 0.70710677, %v2851_v19  ;;  %v2077_v12 = vpop.eup %2076  ;;  %v1063_v54 = vmul.f32 %v2692_v28, %v1031_v55 }
 0x164   : > { %v2880_v4 = vmul.f32 0.70710677, %v2867_v53  ;;  %v810_v61 = vmul.f32 1.0614054, %v2860_v51  ;;  %v720_v32 = vadd.f32 1.0, %v688_v62  ;;  %2084 = vpow2.f32 %v1186_v37 }
 0x165   : > { %3290 = vst [vmem:[#allocation34_spill] sm:$0xff] %v2877_v45  ;;  %v690_v40 = vmul.f32 0.3275911, %v2858_v3  ;;  %v811_v46 = vmul.f32 1.0614054, %v2869_v31  ;;  %v1350_v19 = vsel %vm1286_vm0, %v1318_v11, %v1254_v10  ;;  %v2894_v53 = vmul.f32 %v2071_v20, %v1065_v48 }
 0x166   : > { %3291 = vst [vmem:[#allocation35_spill] sm:$0xff] %v2880_v4  ;;  %v2887_v16 = vmul.f32 0.70710677, %v2864_v47  ;;  %v2890_v5 = vand.u32 2147483647, %v2880_v4  ;;  %v1133_v55 = vsub.f32 0.0, %v1101_v42  ;;  %v1099_v62 = vmul.f32 %v2733_v43, %v2733_v43 }
 0x167   : > { %v908_v28 = vadd.f32 1.4214138, %v876_v41  ;;  %v721_v50 = vadd.f32 1.0, %v689_v34  ;;  %v2899_v37 = vand.u32 2147483647, %v2877_v45  ;;  %v1223_v58 = vmul.f32 %v2077_v12, %v1063_v54  ;;  %v3296_v45 = vld [vmem:[#allocation2_spill] sm:$0xff] }
 0x168   : > { %3292 = vst [vmem:[#allocation36_spill] sm:$0xff] %v2887_v16  ;;  %v691_v47 = vmul.f32 0.3275911, %v2890_v5  ;;  %v842_v33 = vadd.f32 -1.4531521, %v810_v61  ;;  %v722_v57 = vadd.f32 1.0, %v690_v40  ;;  %2086 = vrcp.f32 %v720_v32 }
 0x169   : > { %v1182_v4 = vmul.f32 1.442695, %v1130_v23  ;;  %v843_v15 = vadd.f32 -1.4531521, %v811_v46  ;;  %v2903_v6 = vand.u32 2147483647, %v2887_v16  ;;  %v940_v23 = vmul.f32 %v2800_v29, %v908_v28 }
 0x16a   : > { %v723_v20 = vadd.f32 1.0, %v691_v47  ;;  %v1382_v10 = vadd.f32 1.0, %v1350_v19  ;;  %v3232_v11 = vsub.f32 1.0, %v2894_v53  ;;  %v1188_v43 = vmul.f32 1.442695, %v1133_v55 }
 0x16b   : > { %v2907_v48 = vmul.f32 0.5, %v2696_v35  ;;  %v2909_v41 = vpop.eup %2078  ;;  %vm1287_vm1 = vcmp.lt.f32.partialorder %v2576_v59, 0.0  ;;  %v1131_v42 = vsub.f32 0.0, %v1099_v62  ;;  %2088 = vrcp.f32 %v721_v50  ;;  %v3294_v50 = vld [vmem:[#allocation16_spill] sm:$0xff] }
 0x16c   : > { %v693_v34 = vmul.f32 0.3275911, %v2899_v37  ;;  %v1255_v12 = vsub.f32 1.0, %v1223_v58  ;;  %v874_v47 = vmul.f32 %v2860_v51, %v842_v33  ;;  %v1104_v19 = vmul.f32 %v2834_v36, %v2834_v36 }
 0x16d   : > { %3293 = vst [vmem:[#allocation37_spill] sm:$0xff] %v2907_v48  ;;  %2090 = vrcp.f32 %v722_v57  ;;  %v875_v35 = vmul.f32 %v2869_v31, %v843_v15  ;;  %v692_v54 = vmul.f32 0.3275911, %v2903_v6  ;;  %v1430_v61 = vpack.c.bf16 %v2581_v21, %v2546_v24 }
 0x16e   : > { %2092 = vrcp.f32 %v723_v20  ;;  %v2922_v32 = vmul.f32 %v1382_v10, %v2682_v52  ;;  %v813_v58 = vmul.f32 1.0614054, %v2909_v41  ;;  %v794_v33 = vmul.f32 1.0614054, %v3294_v50 }
 0x16f   : > { %2094 = vpow2.f32 %v1182_v4  ;;  %v2926_v40 = vpop.eup %2080  ;;  %v2930_v57 = vsub.f32 0.0, %v3232_v11  ;;  %v972_v15 = vadd.f32 -0.28449672, %v940_v23  ;;  %v1184_v36 = vmul.f32 1.442695, %v1131_v42  ;;  %1911 = vmatprep.mubr.bf16.mxu0 %v1430_v61 }
 0x170   : > { %v725_v46 = vadd.f32 1.0, %v693_v34  ;;  %v2932_v28 = vpop.eup %2082  ;;  %v1319_v24 = vsub.f32 0.0, %v1255_v12  ;;  %v906_v21 = vadd.f32 1.4214138, %v874_v47  ;;  %2096 = vpow2.f32 %v1188_v43 }
 0x171   : > { %v3295_v52 = vpack.c.bf16 %v2538_v2, %v2532_v18  ;;  %v795_v4 = vmul.f32 1.0614054, %v2498_v22  ;;  %v907_v55 = vadd.f32 1.4214138, %v875_v35  ;;  %v1136_v62 = vsub.f32 0.0, %v1104_v19  ;;  %v2938_v11 = vpop.eup %2084 }
 0x172   : > { %v724_v20 = vadd.f32 1.0, %v692_v54  ;;  %v826_v10 = vadd.f32 -1.4531521, %v794_v33  ;;  %v845_v23 = vadd.f32 -1.4531521, %v813_v58  ;;  %v1102_v42 = vmul.f32 %v2805_v0, %v2805_v0 }
 0x173   : > { %1912 = vmatmul.mubr.bf16.vlgmr.msra.gmra.mxu0 %v3295_v52  ;;  %v815_v34 = vmul.f32 1.0614054, %v2926_v40  ;;  %v827_v47 = vadd.f32 -1.4531521, %v795_v4  ;;  %v1004_v43 = vmul.f32 %v2800_v29, %v972_v15  ;;  %v814_v18 = vmul.f32 1.0614054, %v2932_v28 }
 0x174   : > { %2098 = vrcp.f32 %v725_v46  ;;  %v858_v2 = vmul.f32 %v3294_v50, %v826_v10  ;;  %v1351_v19 = vsel %vm1287_vm1, %v1319_v24, %v1255_v12  ;;  %v938_v35 = vmul.f32 %v2860_v51, %v906_v21 }
 0x175   : > { %2100 = vpow2.f32 %v1184_v36  ;;  %v859_v54 = vmul.f32 %v2498_v22, %v827_v47  ;;  %v939_v0 = vmul.f32 %v2869_v31, %v907_v55  ;;  %v1194_v61 = vmul.f32 1.442695, %v1136_v62  ;;  %v2951_v33 = vpop.eup %2086 }
 0x176   : > { %2102 = vrcp.f32 %v724_v20  ;;  %v890_v58 = vadd.f32 1.4214138, %v858_v2  ;;  %v877_v15 = vmul.f32 %v2909_v41, %v845_v23  ;;  %v1134_v46 = vsub.f32 0.0, %v1102_v42 }
 0x177   : > { %v847_v52 = vadd.f32 -1.4531521, %v815_v34  ;;  %v891_v4 = vadd.f32 1.4214138, %v859_v54  ;;  %v2954_v10 = vadd.f32 1.0, %v1351_v19  ;;  %v1105_v55 = vmul.f32 %v2848_v38, %v2848_v38 }
 0x178   : > { %v2956_v59 = vadd.f32 0.2548296, %v1004_v43  ;;  %v846_v12 = vadd.f32 -1.4531521, %v814_v18  ;;  %v922_v36 = vmul.f32 %v3294_v50, %v890_v58  ;;  %v2959_v24 = vpop.eup %2088  ;;  %v970_v21 = vadd.f32 -0.28449672, %v938_v35 }
 0x179   : > { %v1103_v62 = vmul.f32 %v2798_v1, %v2798_v1  ;;  %v923_v20 = vmul.f32 %v2498_v22, %v891_v4  ;;  %v971_v42 = vadd.f32 -0.28449672, %v939_v0  ;;  %v816_v34 = vmul.f32 1.0614054, %v2951_v33 }
 0x17a   : > { %v2966_v23 = vpop.eup %2090  ;;  %2104 = vpow2.f32 %v1194_v61  ;;  %v954_v47 = vadd.f32 -0.28449672, %v922_v36  ;;  %v909_v18 = vadd.f32 1.4214138, %v877_v15  ;;  %v1190_v2 = vmul.f32 1.442695, %v1134_v46 }
 0x17b   : > { %v2969_v43 = vpop.eup %2092  ;;  %v879_v19 = vmul.f32 %v2926_v40, %v847_v52  ;;  %v955_v35 = vadd.f32 -0.28449672, %v923_v20  ;;  %v878_v1 = vmul.f32 %v2932_v28, %v846_v12  ;;  %v817_v54 = vmul.f32 1.0614054, %v2959_v24 }
 0x17c   : > { %v2972_v38 = vpop.eup %2094  ;;  %v819_v58 = vmul.f32 1.0614054, %v2969_v43  ;;  %v986_v0 = vmul.f32 %v3294_v50, %v954_v47  ;;  %v1137_v4 = vsub.f32 0.0, %v1105_v55  ;;  %v1135_v61 = vsub.f32 0.0, %v1103_v62  ;;  %v3297_v62 = vld [vmem:[#allocation5_spill] sm:$0xff] }
 0x17d   : > { %v818_v36 = vmul.f32 1.0614054, %v2966_v23  ;;  %v987_v15 = vmul.f32 %v2498_v22, %v955_v35  ;;  %v2980_v46 = vpop.eup %2096  ;;  %v1002_v52 = vmul.f32 %v2860_v51, %v970_v21  ;;  %v1003_v20 = vmul.f32 %v2869_v31, %v971_v42 }
 0x17e   : > { %v848_v16 = vadd.f32 -1.4531521, %v816_v34  ;;  %v1018_v12 = vadd.f32 0.2548296, %v986_v0  ;;  %vm1274_vm2 = vcmp.lt.f32.partialorder %v3296_v45, 0.0  ;;  %v941_v60 = vmul.f32 %v2909_v41, %v909_v18 }
 0x17f   : > { %v911_v13 = vadd.f32 1.4214138, %v879_v19  ;;  %v851_v47 = vadd.f32 -1.4531521, %v819_v58  ;;  %v1019_v55 = vadd.f32 0.2548296, %v987_v15  ;;  %2106 = vpow2.f32 %v1190_v2 }
 0x180   : > { %vm1275_vm3 = vcmp.lt.f32.partialorder %v3297_v62, 0.0  ;;  %v910_v14 = vadd.f32 1.4214138, %v878_v1  ;;  %v849_v35 = vadd.f32 -1.4531521, %v817_v54  ;;  %v1050_v48 = vmul.f32 %v3294_v50, %v1018_v12  ;;  %v3298_v15 = vld [vmem:[#allocation17_spill] sm:$0xff] }
 0x181   : > { %v2988_v26 = vpop.eup %2098  ;;  %v2990_v21 = vmul.f32 1.442695, %v1137_v4  ;;  %v1192_v42 = vmul.f32 1.442695, %v1135_v61  ;;  %v850_v34 = vadd.f32 -1.4531521, %v818_v36  ;;  %v1051_v0 = vmul.f32 %v2498_v22, %v1019_v55 }
 0x182   : > { %v2101_v8 = vpop.eup %2100  ;;  %v1034_v18 = vadd.f32 0.2548296, %v1002_v52  ;;  %v1035_v19 = vadd.f32 0.2548296, %v1003_v20  ;;  %v880_v58 = vmul.f32 %v2951_v33, %v848_v16  ;;  %v1210_v25 = vmul.f32 %v3298_v15, %v1050_v48  ;;  %v3300_v62 = vld [vmem:[#allocation3_spill] sm:$0xff] }
 0x183   : > { %v2995_v1 = vpop.eup %2102  ;;  %v973_v2 = vadd.f32 -0.28449672, %v941_v60  ;;  %v943_v50 = vmul.f32 %v2926_v40, %v911_v13  ;;  %v883_v54 = vmul.f32 %v2969_v43, %v851_v47  ;;  %v1211_v4 = vmul.f32 %v2529_v17, %v1051_v0 }
 0x184   : > { %v942_v61 = vmul.f32 %v2932_v28, %v910_v14  ;;  %v881_v22 = vmul.f32 %v2959_v24, %v849_v35  ;;  %v821_v36 = vmul.f32 1.0614054, %v2988_v26  ;;  %v1242_v52 = vsub.f32 1.0, %v1210_v25 }
 0x185   : > { %2108 = vpow2.f32 %v1192_v42  ;;  %v882_v16 = vmul.f32 %v2966_v23, %v850_v34  ;;  %v1107_v48 = vmul.f32 %v2890_v5, %v2890_v5  ;;  %v1243_v60 = vsub.f32 1.0, %v1211_v4 }
 0x186   : > { %v1067_v13 = vmul.f32 %v2869_v31, %v1035_v19  ;;  %v912_v20 = vadd.f32 1.4214138, %v880_v58  ;;  %v820_v12 = vmul.f32 1.0614054, %v2995_v1  ;;  %v1306_v17 = vsub.f32 0.0, %v1242_v52 }
 0x187   : > { %v3008_v47 = vpop.eup %2104  ;;  %v975_v14 = vadd.f32 -0.28449672, %v943_v50  ;;  %v1106_v55 = vmul.f32 %v2858_v3, %v2858_v3  ;;  %v915_v25 = vadd.f32 1.4214138, %v883_v54  ;;  %v1307_v35 = vsub.f32 0.0, %v1243_v60 }
 0x188   : > { %3299 = vst [vmem:[#allocation16_spill] sm:$0xff] %v3008_v47  ;;  %v974_v42 = vadd.f32 -0.28449672, %v942_v61  ;;  %v913_v34 = vadd.f32 1.4214138, %v881_v22  ;;  %v1338_v5 = vsel %vm1274_vm2, %v1306_v17, %v1242_v52  ;;  %v1139_v31 = vsub.f32 0.0, %v1107_v48 }
 0x189   : > { %v853_v0 = vadd.f32 -1.4531521, %v821_v36  ;;  %v914_v15 = vadd.f32 1.4214138, %v882_v16  ;;  %v1339_v19 = vsel %vm1275_vm3, %v1307_v35, %v1243_v60  ;;  %v1370_v58 = vadd.f32 1.0, %v1338_v5  ;;  %v3301_v48 = vld [vmem:[#allocation4_spill] sm:$0xff] }
 0x18a   : > { %v1066_v4 = vmul.f32 %v2860_v51, %v1034_v18  ;;  %v1005_v50 = vmul.f32 %v2909_v41, %v973_v2  ;;  %v852_v47 = vadd.f32 -1.4531521, %v820_v12  ;;  %v1371_v3 = vadd.f32 1.0, %v1339_v19 }
 0x18b   : > { %v944_v54 = vmul.f32 %v2951_v33, %v912_v20  ;;  %v1007_v61 = vmul.f32 %v2926_v40, %v975_v14  ;;  %v1138_v22 = vsub.f32 0.0, %v1106_v55  ;;  %v947_v45 = vmul.f32 %v2969_v43, %v915_v25 }
 0x18c   : > { %v945_v36 = vmul.f32 %v2959_v24, %v913_v34  ;;  %v885_v52 = vmul.f32 %v2988_v26, %v853_v0  ;;  %v1402_v16 = vmul.f32 %v1370_v58, %v3300_v62  ;;  %v1403_v60 = vmul.f32 %v1371_v3, %v3301_v48  ;;  %v2107_v51 = vpop.eup %2106 }
 0x18d   : > { %v3025_v18 = vmul.f32 %v2101_v8, %v1067_v13  ;;  %v1006_v2 = vmul.f32 %v2932_v28, %v974_v42  ;;  %v946_v20 = vmul.f32 %v2966_v23, %v914_v15  ;;  %v1200_v12 = vmul.f32 1.442695, %v1139_v31 }
 0x18e   : > { %v884_v17 = vmul.f32 %v2995_v1, %v852_v47  ;;  %v1109_v14 = vmul.f32 %v2899_v37, %v2899_v37  ;;  %v1432_v55 = vpack.c.bf16 %v1403_v60, %v1402_v16  ;;  %v1434_v25 = vpack.c.bf16 %v2766_v49, %v2676_v7  ;;  %v3302_v7 = vld [vmem:[#allocation18_spill] sm:$0xff] }
 0x18f   : > { %v1039_v35 = vadd.f32 0.2548296, %v1007_v61  ;;  %v1198_v34 = vmul.f32 1.442695, %v1138_v22  ;;  %v979_v0 = vadd.f32 -0.28449672, %v947_v45  ;;  %v1433_v8 = vpack.c.bf16 %v2632_v30, %v2593_v39 }
 0x190   : > { %v1037_v13 = vadd.f32 0.2548296, %v1005_v50  ;;  %v977_v42 = vadd.f32 -0.28449672, %v945_v36  ;;  %v1108_v5 = vmul.f32 %v2903_v6, %v2903_v6  ;;  %v917_v15 = vadd.f32 1.4214138, %v885_v52  ;;  %1915 = vmatprep.mubr.bf16.mxu1 %v1432_v55 }
 0x191   : > { %v1226_v47 = vmul.f32 %v2972_v38, %v1066_v4  ;;  %v1038_v37 = vadd.f32 0.2548296, %v1006_v2  ;;  %v978_v31 = vadd.f32 -0.28449672, %v946_v20  ;;  %2110 = vpow2.f32 %v1200_v12  ;;  %1916 = vmatmul.mubr.bf16.vlgmr.msra.gmra.mxu1 %v1433_v8  ;;  %v3303_v60 = vld [vmem:[#allocation6_spill] sm:$0xff] }
 0x192   : > { %v2109_v49 = vpop.eup %2108  ;;  %vm1289_vm4 = vcmp.lt.f32.partialorder %v3302_v7, 0.0  ;;  %vm1291_vm5 = vcmp.lt.f32.partialorder %v2714_v27, 0.0  ;;  %v976_v19 = vadd.f32 -0.28449672, %v944_v54  ;;  %2112 = vpow2.f32 %v2990_v21  ;;  %1919 = vmatprep.mubr.bf16.mxu1 %v1434_v25  ;;  %v3304_v55 = vld [vmem:[#allocation14_spill] sm:$0xff]  ;;  %v3307_v7 = vld [vmem:[#allocation21_spill] sm:$0xff] }
 0x193   : > { %v916_v39 = vadd.f32 1.4214138, %v884_v17  ;;  %v1141_v30 = vsub.f32 0.0, %v1109_v14  ;;  %v1259_v6 = vsub.f32 1.0, %v3025_v18  ;;  %v1071_v58 = vmul.f32 %v2926_v40, %v1039_v35 }
 0x194   : > { %2114 = vpow2.f32 %v1198_v34  ;;  %v1011_v38 = vmul.f32 %v2969_v43, %v979_v0  ;;  %vm1290_vm6 = vcmp.lt.f32.partialorder %v2710_v56, 0.0  ;;  %v1069_v4 = vmul.f32 %v2909_v41, %v1037_v13  ;;  %v3306_v34 = vld [vmem:[#allocation7_spill] sm:$0xff] }
 0x195   : > { %v1009_v50 = vmul.f32 %v2959_v24, %v977_v42  ;;  %v1140_v3 = vsub.f32 0.0, %v1108_v5  ;;  %v949_v54 = vmul.f32 %v2988_v26, %v917_v15  ;;  %v1068_v21 = vmul.f32 %v2800_v29, %v2956_v59 }
 0x196   : > { %v1258_v61 = vsub.f32 1.0, %v1226_v47  ;;  %v1070_v22 = vmul.f32 %v2932_v28, %v1038_v37  ;;  %v1010_v40 = vmul.f32 %v2966_v23, %v978_v31  ;;  %v1008_v45 = vmul.f32 %v2951_v33, %v976_v19  ;;  %v3308_v19 = vld [vmem:[#allocation29_spill] sm:$0xff] }
 0x197   : > { %v948_v36 = vmul.f32 %v2995_v1, %v916_v39  ;;  %v1204_v52 = vmul.f32 1.442695, %v1141_v30  ;;  %v1436_v41 = vpack.c.bf16 %v2854_v9, %v2818_v44  ;;  %v1323_v62 = vsub.f32 0.0, %v1259_v6 }
 0x198   : > { %v1231_v16 = vmul.f32 %v2109_v49, %v1071_v58  ;;  %v1043_v48 = vadd.f32 0.2548296, %v1011_v38  ;;  %v1435_v18 = vpack.c.bf16 %v3303_v60, %v2653_v63  ;;  %v1229_v29 = vmul.f32 %v2980_v46, %v1069_v4  ;;  %v3309_v4 = vld [vmem:[#allocation9_spill] sm:$0xff] }
 0x199   : > { %v1041_v59 = vadd.f32 0.2548296, %v1009_v50  ;;  %v1202_v28 = vmul.f32 1.442695, %v1140_v3  ;;  %v981_v2 = vadd.f32 -0.28449672, %v949_v54  ;;  %v1228_v20 = vmul.f32 %v2938_v11, %v1068_v21 }
 0x19a   : > { %v1322_v12 = vsub.f32 0.0, %v1258_v61  ;;  %v1230_v17 = vmul.f32 %v2107_v51, %v1070_v22  ;;  %v1042_v14 = vadd.f32 0.2548296, %v1010_v40  ;;  %1920 = vmatmul.mubr.bf16.gmra.mxu1 %v1435_v18  ;;  %v1415_v44 = vmul.f32 %v2954_v10, %v3304_v55  ;;  %v3310_v3 = vld [vmem:[#allocation37_spill] sm:$0xff]  ;;  %v3311_v54 = vld [vmem:[#allocation16_spill] sm:$0xff] }
 0x19b   : > { %v1040_v9 = vadd.f32 0.2548296, %v1008_v45  ;;  %v980_v25 = vadd.f32 -0.28449672, %v948_v36  ;;  %2116 = vpow2.f32 %v1204_v52  ;;  %1923 = vmatprep.mubr.bf16.mxu1 %v1436_v41  ;;  %v3305_v63 = vsub.f32 1.0, %v2894_v53  ;;  %v3313_v40 = vld [vmem:[#allocation13_spill] sm:$0xff] }
 0x19c   : > { %v1355_v11 = vsel %vm1291_vm5, %v1323_v62, %v1259_v6  ;;  %v1263_v35 = vsub.f32 1.0, %v1231_v16  ;;  %v1075_v51 = vmul.f32 %v2969_v43, %v1043_v48  ;;  %vm1292_vm7 = vcmp.lt.f32.partialorder %v3306_v34, 0.0  ;;  %v3314_v36 = vld [vmem:[#allocation15_spill] sm:$0xff]  ;;  %v3315_v62 = vld [vmem:[#allocation26_spill] sm:$0xff]  ;;  %v3319_v34 = vld [vmem:[#allocation8_spill] sm:$0xff] }
 0x19d   : > { %v1353_v46 = vsel %vm1289_vm4, %v2930_v57, %v3305_v63  ;;  %v1261_v0 = vsub.f32 1.0, %v1229_v29  ;;  %v1073_v10 = vmul.f32 %v2959_v24, %v1041_v59  ;;  %2118 = vpow2.f32 %v1202_v28  ;;  %v3316_v29 = vld [vmem:[#allocation10_spill] sm:$0xff] }
 0x19e   : > { %v1013_v8 = vmul.f32 %v2988_v26, %v981_v2  ;;  %v1260_v13 = vsub.f32 1.0, %v1228_v20  ;;  %v1354_v53 = vsel %vm1290_vm6, %v1322_v12, %v1258_v61  ;;  %v1262_v42 = vsub.f32 1.0, %v1230_v17  ;;  %v2111_v27 = vpop.eup %2110  ;;  %v3312_v61 = vld [vmem:[#allocation20_spill] sm:$0xff]  ;;  %v3317_v59 = vld [vmem:[#allocation30_spill] sm:$0xff] }
 0x19f   : > { %v1074_v57 = vmul.f32 %v2966_v23, %v1042_v14  ;;  %v1387_v5 = vadd.f32 1.0, %v1355_v11  ;;  %v1072_v15 = vmul.f32 %v2951_v33, %v1040_v9  ;;  %v1012_v43 = vmul.f32 %v2995_v1, %v980_v25  ;;  %v2113_v37 = vpop.eup %2112 }
 0x1a0   : > { %v1438_v47 = vpack.c.bf16 %v1415_v44, %v2922_v32  ;;  %v1385_v24 = vadd.f32 1.0, %v1353_v46  ;;  %v1327_v31 = vsub.f32 0.0, %v1263_v35  ;;  %v1235_v49 = vmul.f32 %v2111_v27, %v1075_v51 }
 0x1a1   : > { %v1437_v39 = vpack.c.bf16 %v3308_v19, %v3307_v7  ;;  %v2115_v56 = vpop.eup %2114  ;;  %v1386_v30 = vadd.f32 1.0, %v1354_v53  ;;  %v1325_v6 = vsub.f32 0.0, %v1261_v0  ;;  %v1233_v58 = vmul.f32 %v2113_v37, %v1073_v10  ;;  %v3320_v53 = vld [vmem:[#allocation12_spill] sm:$0xff] }
 0x1a2   : > { %v1045_v23 = vadd.f32 0.2548296, %v1013_v8  ;;  %v1324_v38 = vsub.f32 0.0, %v1260_v13  ;;  %vm1293_vm8 = vcmp.lt.f32.partialorder %v3309_v4, 0.0  ;;  %v1326_v33 = vsub.f32 0.0, %v1262_v42  ;;  %v3324_v19 = vld [vmem:[#allocation28_spill] sm:$0xff] }
 0x1a3   : > { %v1234_v50 = vmul.f32 %v2115_v56, %v1074_v57  ;;  %1924 = vmatmul.mubr.bf16.gmra.mxu1 %v1437_v39  ;;  %v1419_v32 = vmul.f32 %v1387_v5, %v3310_v3  ;;  %v1232_v21 = vmul.f32 %v3311_v54, %v1072_v15  ;;  %vm1295_vm9 = vcmp.lt.f32.partialorder %v3312_v61, 0.0  ;;  %v3321_v15 = vld [vmem:[#allocation35_spill] sm:$0xff]  ;;  %v3326_v54 = vld [vmem:[#allocation33_spill] sm:$0xff] }
 0x1a4   : > { %v1044_v22 = vadd.f32 0.2548296, %v1012_v43  ;;  %1927 = vmatprep.mubr.bf16.mxu1 %v1438_v47  ;;  %v1417_v45 = vmul.f32 %v1385_v24, %v3313_v40  ;;  %vm1294_vm10 = vcmp.lt.f32.partialorder %v3314_v36, 0.0  ;;  %v1359_v52 = vsel %vm1295_vm9, %v1327_v31, %v1263_v35  ;;  %v3322_v43 = vld [vmem:[#allocation19_spill] sm:$0xff]  ;;  %v3328_v36 = vld [vmem:[#allocation25_spill] sm:$0xff] }
 0x1a5   : > { %v1267_v41 = vsub.f32 1.0, %v1235_v49  ;;  %v1418_v16 = vmul.f32 %v1386_v30, %v3315_v62  ;;  %v1357_v48 = vsel %vm1293_vm8, %v1325_v6, %v1261_v0  ;;  %v1265_v60 = vsub.f32 1.0, %v1233_v58  ;;  %v3323_v24 = vld [vmem:[#allocation27_spill] sm:$0xff]  ;;  %v3325_v30 = vld [vmem:[#allocation24_spill] sm:$0xff]  ;;  %v3329_v62 = vld [vmem:[#allocation22_spill] sm:$0xff] }
 0x1a6   : > { %v1077_v18 = vmul.f32 %v2988_v26, %v1045_v23  ;;  %v1416_v28 = vmul.f32 %v3317_v59, %v3316_v29  ;;  %v1356_v2 = vsel %vm1292_vm7, %v1324_v38, %v1260_v13  ;;  %v1358_v20 = vsel %vm1294_vm10, %v1326_v33, %v1262_v42  ;;  %v3318_v26 = vld [vmem:[#allocation11_spill] sm:$0xff] }
 0x1a7   : > { %v1266_v12 = vsub.f32 1.0, %v1234_v50  ;;  %v1264_v17 = vsub.f32 1.0, %v1232_v21  ;;  %v1391_v14 = vadd.f32 1.0, %v1359_v52  ;;  %v1076_v55 = vmul.f32 %v2995_v1, %v1044_v22  ;;  %v3327_v22 = vld [vmem:[#allocation23_spill] sm:$0xff] }
 0x1a8   : > { %v1440_v44 = vpack.c.bf16 %v1419_v32, %v1418_v16  ;;  %v2117_v9 = vpop.eup %2116  ;;  %v1389_v25 = vadd.f32 1.0, %v1357_v48  ;;  %v1331_v63 = vsub.f32 0.0, %v1267_v41  ;;  %v1439_v46 = vpack.c.bf16 %v1417_v45, %v1416_v28  ;;  %v3331_v28 = vld [vmem:[#allocation36_spill] sm:$0xff] }
 0x1a9   : > { %v1390_v11 = vadd.f32 1.0, %v1358_v20  ;;  %v1329_v35 = vsub.f32 0.0, %v1265_v60  ;;  %v591_v51 = vmul.f32 0.5, %v3318_v26  ;;  %v1237_v0 = vmul.f32 %v2117_v9, %v1077_v18  ;;  %v3333_v9 = vld [vmem:[#allocation32_spill] sm:$0xff] }
 0x1aa   : > { %v2119_v10 = vpop.eup %2118  ;;  %v1388_v8 = vadd.f32 1.0, %v1356_v2  ;;  %v589_v13 = vmul.f32 0.5, %v3319_v34  ;;  %v590_v42 = vmul.f32 0.5, %v3320_v53  ;;  %v1330_v57 = vsub.f32 0.0, %v1266_v12 }
 0x1ab   : > { %1928 = vmatmul.mubr.bf16.gmra.mxu1 %v1439_v46  ;;  %v1328_v27 = vsub.f32 0.0, %v1264_v17  ;;  %v1423_v1 = vmul.f32 %v1391_v14, %v591_v51  ;;  %v1236_v5 = vmul.f32 %v2119_v10, %v1076_v55  ;;  %vm1299_vm11 = vcmp.lt.f32.partialorder %v3321_v15, 0.0  ;;  %v3332_v55 = vld [vmem:[#allocation31_spill] sm:$0xff] }
 0x1ac   : > { %1931 = vmatprep.mubr.bf16.mxu1 %v1440_v44  ;;  %v588_v47 = vmul.f32 0.5, %v3322_v43  ;;  %v1421_v37 = vmul.f32 %v1389_v25, %v589_v13  ;;  %vm1297_vm12 = vcmp.lt.f32.partialorder %v3323_v24, 0.0  ;;  %v1363_v31 = vsel %vm1299_vm11, %v1331_v63, %v1267_v41 }
 0x1ad   : > { %v1422_v49 = vmul.f32 %v1390_v11, %v590_v42  ;;  %v1361_v7 = vsel %vm1297_vm12, %v1329_v35, %v1265_v60  ;;  %vm1298_vm13 = vcmp.lt.f32.partialorder %v3324_v19, 0.0  ;;  %v1269_v39 = vsub.f32 1.0, %v1237_v0  ;;  %v3330_v60 = vld [vmem:[#allocation34_spill] sm:$0xff] }
 0x1ae   : > { %v1420_v56 = vmul.f32 %v1388_v8, %v588_v47  ;;  %vm1296_vm14 = vcmp.lt.f32.partialorder %v3325_v30, 0.0  ;;  %v1362_v6 = vsel %vm1298_vm13, %v1330_v57, %v1266_v12  ;;  %v1268_v23 = vsub.f32 1.0, %v1236_v5  ;;  %v3115_v35 = vld [vmem:[%s3193_s4] ss:$0 sm:$0xff] }
 0x1af   : > { %v1360_v58 = vsel %vm1296_vm14, %v1328_v27, %v1264_v17  ;;  %v1395_v38 = vadd.f32 1.0, %v1363_v31  ;;  %v1442_v4 = vpack.c.bf16 %v1423_v1, %v1422_v49  ;;  %v1393_v33 = vadd.f32 1.0, %v1361_v7 }
 0x1b0   : > { %v1441_v50 = vpack.c.bf16 %v1421_v37, %v1420_v56  ;;  %v1394_v3 = vadd.f32 1.0, %v1362_v6  ;;  %v1333_v32 = vsub.f32 0.0, %v1269_v39  ;;  %v595_v21 = vmul.f32 0.5, %v3326_v54 }
 0x1b1   : > { %v1392_v61 = vadd.f32 1.0, %v1360_v58  ;;  %v593_v40 = vmul.f32 0.5, %v3327_v22  ;;  %v1332_v45 = vsub.f32 0.0, %v1268_v23  ;;  %v594_v52 = vmul.f32 0.5, %v3328_v36 }
 0x1b2   : > { %v1427_v41 = vmul.f32 %v1395_v38, %v595_v21  ;;  %v592_v16 = vmul.f32 0.5, %v3329_v62  ;;  %vm1301_vm15 = vcmp.lt.f32.partialorder %v3330_v60, 0.0  ;;  %vm1300_vm0 = vcmp.lt.f32.partialorder %v3331_v28, 0.0 }
 0x1b3   : > { %1932 = vmatmul.mubr.bf16.gmra.mxu1 %v1441_v50  ;;  %v1425_v48 = vmul.f32 %v1393_v33, %v593_v40  ;;  %v1426_v18 = vmul.f32 %v1394_v3, %v594_v52  ;;  %v1365_v29 = vsel %vm1301_vm15, %v1333_v32, %v1269_v39  ;;  %v1364_v2 = vsel %vm1300_vm0, %v1332_v45, %v1268_v23 }
 0x1b4   : > { %1935 = vmatprep.mubr.bf16.mxu1 %v1442_v4  ;;  %v1424_v59 = vmul.f32 %v1392_v61, %v592_v16  ;;  %v1397_v12 = vadd.f32 1.0, %v1365_v29  ;;  %v1396_v14 = vadd.f32 1.0, %v1364_v2  ;;  %v597_v44 = vmul.f32 0.5, %v3332_v55 }
 0x1b5   : > { %v1444_v20 = vpack.c.bf16 %v1427_v41, %v1426_v18  ;;  %v596_v25 = vmul.f32 0.5, %v3333_v9 }
 0x1b6   : > { %v1443_v17 = vpack.c.bf16 %v1425_v48, %v1424_v59  ;;  %v1429_v63 = vmul.f32 %v1397_v12, %v597_v44 }
 0x1b7   : > { %v1428_v46 = vmul.f32 %v1396_v14, %v596_v25 }
 0x1b9   : > { %v1445_v11 = vpack.c.bf16 %v1429_v63, %v1428_v46 }
 0x1bb   : > { %1936 = vmatmul.mubr.bf16.gmra.mxu1 %v1443_v17 }
 0x1bc   : > { %1939 = vmatprep.mubr.bf16.mxu1 %v1444_v20 }
 0x1c3   : > { %1940 = vmatmul.mubr.bf16.gmra.mxu1 %v1445_v11 }
 0x233   : > { %v1913_v26 = vpop.f32.mrf.mxu0 }
 0x234   : > { %v1560_v51 = vadd.f32 %v1913_v26, %v3115_v35 }
 0x235   : > { %v1551_v0 = vpop.f32.mrf.mxu0 }
 0x236   : > { %1680 = vst [vmem:[%s3120_s29 + $0x10] sm:$0xff] %v1560_v51  ;;  %v1552_v10 = vadd.f32 %v3115_v35, %v1551_v0 }
 0x237   : > { %v1914_v8 = vpop.f32.mrf.mxu0 }
 0x238   : > { %1678 = vst [vmem:[%s3120_s29] sm:$0xff] %v1552_v10  ;;  %v1563_v34 = vadd.f32 %v1914_v8, %v3115_v35 }
 0x239   : > { %v1554_v13 = vpop.f32.mrf.mxu0 }
 0x23a   : > { %1681 = vst [vmem:[%s3120_s29 + $0x18] sm:$0xff] %v1563_v34  ;;  %v1555_v53 = vadd.f32 %v3115_v35, %v1554_v13 }
 0x23c   : > { %1679 = vst [vmem:[%s3120_s29 + $0x8] sm:$0xff] %v1555_v53 }
 0x251   : > { %v1917_v42 = vpop.f32.mrf.mxu1 }
 0x252   : > { %v1576_v57 = vadd.f32 %v1917_v42, %v3115_v35 }
 0x253   : > { %v1567_v27 = vpop.f32.mrf.mxu1 }
 0x254   : > { %1684 = vst [vmem:[%s3120_s29 + $0x30] sm:$0xff] %v1576_v57  ;;  %v1568_v1 = vadd.f32 %v3115_v35, %v1567_v27 }
 0x255   : > { %v1918_v5 = vpop.f32.mrf.mxu1 }
 0x256   : > { %1682 = vst [vmem:[%s3120_s29 + $0x20] sm:$0xff] %v1568_v1  ;;  %v1579_v15 = vadd.f32 %v1918_v5, %v3115_v35 }
 0x257   : > { %v1570_v43 = vpop.f32.mrf.mxu1 }
 0x258   : > { %1685 = vst [vmem:[%s3120_s29 + $0x38] sm:$0xff] %v1579_v15  ;;  %v1571_v47 = vadd.f32 %v3115_v35, %v1570_v43 }
 0x25a   : > { %v1921_v37 = vpop.f32.mrf.mxu1  ;;  %1683 = vst [vmem:[%s3120_s29 + $0x28] sm:$0xff] %v1571_v47 }
 0x25b   : > { %v1592_v24 = vadd.f32 %v1921_v37, %v3115_v35 }
 0x25c   : > { %v1583_v31 = vpop.f32.mrf.mxu1 }
 0x25d   : > { %1688 = vst [vmem:[%s3120_s29 + $0x50] sm:$0xff] %v1592_v24  ;;  %v1584_v49 = vadd.f32 %v3115_v35, %v1583_v31 }
 0x25e   : > { %v1922_v7 = vpop.f32.mrf.mxu1 }
 0x25f   : > { %1686 = vst [vmem:[%s3120_s29 + $0x40] sm:$0xff] %v1584_v49  ;;  %v1595_v19 = vadd.f32 %v1922_v7, %v3115_v35 }
 0x260   : > { %v1586_v39 = vpop.f32.mrf.mxu1 }
 0x261   : > { %1689 = vst [vmem:[%s3120_s29 + $0x58] sm:$0xff] %v1595_v19  ;;  %v1587_v56 = vadd.f32 %v3115_v35, %v1586_v39 }
 0x263   : > { %v1925_v30 = vpop.f32.mrf.mxu1  ;;  %1687 = vst [vmem:[%s3120_s29 + $0x48] sm:$0xff] %v1587_v56 }
 0x264   : > { %v1608_v6 = vadd.f32 %v1925_v30, %v3115_v35 }
 0x265   : > { %v1599_v58 = vpop.f32.mrf.mxu1 }
 0x266   : > { %1692 = vst [vmem:[%s3120_s29 + $0x70] sm:$0xff] %v1608_v6  ;;  %v1600_v23 = vadd.f32 %v3115_v35, %v1599_v58 }
 0x267   : > { %v1926_v38 = vpop.f32.mrf.mxu1 }
 0x268   : > { %1690 = vst [vmem:[%s3120_s29 + $0x60] sm:$0xff] %v1600_v23  ;;  %v1611_v4 = vadd.f32 %v1926_v38, %v3115_v35 }
 0x269   : > { %v1602_v33 = vpop.f32.mrf.mxu1 }
 0x26a   : > { %1693 = vst [vmem:[%s3120_s29 + $0x78] sm:$0xff] %v1611_v4  ;;  %v1603_v50 = vadd.f32 %v3115_v35, %v1602_v33 }
 0x26b   : > { %v1929_v3 = vpop.f32.mrf.mxu1 }
 0x26c   : > { %1691 = vst [vmem:[%s3120_s29 + $0x68] sm:$0xff] %v1603_v50  ;;  %v1624_v32 = vadd.f32 %v1929_v3, %v3115_v35 }
 0x26d   : > { %v1615_v54 = vpop.f32.mrf.mxu1 }
 0x26e   : > { %1696 = vst [vmem:[%s3120_s29 + $0x90] sm:$0xff] %v1624_v32  ;;  %v1616_v21 = vadd.f32 %v3115_v35, %v1615_v54 }
 0x26f   : > { %v1930_v61 = vpop.f32.mrf.mxu1 }
 0x270   : > { %1694 = vst [vmem:[%s3120_s29 + $0x80] sm:$0xff] %v1616_v21  ;;  %v1627_v22 = vadd.f32 %v1930_v61, %v3115_v35 }
 0x271   : > { %v1618_v40 = vpop.f32.mrf.mxu1 }
 0x272   : > { %1697 = vst [vmem:[%s3120_s29 + $0x98] sm:$0xff] %v1627_v22  ;;  %v1619_v45 = vadd.f32 %v3115_v35, %v1618_v40 }
 0x273   : > { %v1933_v36 = vpop.f32.mrf.mxu1 }
 0x274   : > { %1695 = vst [vmem:[%s3120_s29 + $0x88] sm:$0xff] %v1619_v45  ;;  %v1640_v52 = vadd.f32 %v1933_v36, %v3115_v35 }
 0x275   : > { %v1631_v41 = vpop.f32.mrf.mxu1 }
 0x276   : > { %1700 = vst [vmem:[%s3120_s29 + $0xb0] sm:$0xff] %v1640_v52  ;;  %v1632_v62 = vadd.f32 %v3115_v35, %v1631_v41 }
 0x277   : > { %v1934_v16 = vpop.f32.mrf.mxu1 }
 0x278   : > { %1698 = vst [vmem:[%s3120_s29 + $0xa0] sm:$0xff] %v1632_v62  ;;  %v1643_v48 = vadd.f32 %v1934_v16, %v3115_v35 }
 0x279   : > { %v1634_v60 = vpop.f32.mrf.mxu1 }
 0x27a   : > { %1701 = vst [vmem:[%s3120_s29 + $0xb8] sm:$0xff] %v1643_v48  ;;  %v1635_v18 = vadd.f32 %v3115_v35, %v1634_v60 }
 0x27b   : > { %v1937_v29 = vpop.f32.mrf.mxu1 }
 0x27c   : > { %1699 = vst [vmem:[%s3120_s29 + $0xa8] sm:$0xff] %v1635_v18  ;;  %v1656_v59 = vadd.f32 %v1937_v29, %v3115_v35 }
 0x27d   : > { %v1647_v28 = vpop.f32.mrf.mxu1 }
 0x27e   : > { %1704 = vst [vmem:[%s3120_s29 + $0xd0] sm:$0xff] %v1656_v59  ;;  %v1648_v2 = vadd.f32 %v3115_v35, %v1647_v28 }
 0x27f   : > { %v1938_v20 = vpop.f32.mrf.mxu1 }
 0x280   : > { %1702 = vst [vmem:[%s3120_s29 + $0xc0] sm:$0xff] %v1648_v2  ;;  %v1659_v12 = vadd.f32 %v1938_v20, %v3115_v35 }
 0x281   : > { %v1650_v17 = vpop.f32.mrf.mxu1 }
 0x282   : > { %1705 = vst [vmem:[%s3120_s29 + $0xd8] sm:$0xff] %v1659_v12  ;;  %v1651_v14 = vadd.f32 %v3115_v35, %v1650_v17 }
 0x283   : > { %v1941_v55 = vpop.f32.mrf.mxu1 }
 0x284   : > { %1703 = vst [vmem:[%s3120_s29 + $0xc8] sm:$0xff] %v1651_v14  ;;  %v1672_v44 = vadd.f32 %v1941_v55, %v3115_v35 }
 0x285   : > { %v1663_v9 = vpop.f32.mrf.mxu1 }
 0x286   : > { %1708 = vst [vmem:[%s3120_s29 + $0xf0] sm:$0xff] %v1672_v44  ;;  %v1664_v25 = vadd.f32 %v3115_v35, %v1663_v9 }
 0x287   : > { %v1942_v63 = vpop.f32.mrf.mxu1 }
 0x288   : > { %1706 = vst [vmem:[%s3120_s29 + $0xe0] sm:$0xff] %v1664_v25  ;;  %v1675_v46 = vadd.f32 %v1942_v63, %v3115_v35 }
 0x289   : > { %v1666_v11 = vpop.f32.mrf.mxu1 }
 0x28a   : > { %1709 = vst [vmem:[%s3120_s29 + $0xf8] sm:$0xff] %v1675_v46  ;;  %v1667_v26 = vadd.f32 %v3115_v35, %v1666_v11 }
 0x28c   : > { %1707 = vst [vmem:[%s3120_s29 + $0xe8] sm:$0xff] %v1667_v26 }
 0x28d PF: > { %s15_s18 = sadd.s32 1, %s2127_s18  }
 0x28e   : > { %p12_p4 = scmp.ge.s32.totalorder %s15_s18, 4  }
 0x290   :  { %14 = sbr.rel (!%p12_p4) target bundleno = 1 (0x1), region = 70 }

</bundles_post_ra>
